<compile_context>
chip_gen: v7x
topology: tpu7x:2x2x1
jax: 0.10.0
libtpu: 0.0.40
codegen_flags: <defaults>
</compile_context>

<pallas_src>
import functools

import numpy as np

import jax
import jax.numpy as jnp
from jax import lax
from jax.experimental import pallas as pl
from jax.experimental.pallas import tpu as pltpu


def _round_up(n, m):
    return (n + m - 1) // m * m


# ----------------------------- Pallas kernel ------------------------------ #

def _mm_bias_act_kernel(a_ref, w_ref, b_ref, o_ref, *, act):
    """Fused (S, K) @ (K, TN) -> (S, TN): matmul + bias + activation.

    bf16 operands, f32 MXU accumulation; bias/act on the f32 accumulator;
    output stored f32 with a lane-dense last dim (TN multiple of 128 or full).
    """
    acc = jnp.dot(a_ref[...], w_ref[...], preferred_element_type=jnp.float32)
    acc = acc + b_ref[...]          # (1, TN) or (S, 1) broadcast
    if act == "relu":
        acc = jnp.maximum(acc, 0.0)
    elif act == "tanh":
        acc = jnp.tanh(acc)
    o_ref[...] = acc.astype(o_ref.dtype)


def matmul_bias_act(a, w, bias2d, act):
    """y = act(a @ w + bias2d) with bf16 operands and f32 accumulation.

    The contraction dim is zero-padded to a multiple of 128 (the weight-side
    operand is pre-padded at prepare time, so only the small activation-side
    operand gets a tiny runtime pad).  The output N axis stays lane-dense and
    is split into 2 "parallel" grid steps when large enough (v7x megacore).
    """
    k_pad = _round_up(max(a.shape[1], w.shape[0]), 128)
    if a.shape[1] < k_pad:
        a = jnp.pad(a, ((0, 0), (0, k_pad - a.shape[1])))
    if w.shape[0] < k_pad:
        w = jnp.pad(w, ((0, k_pad - w.shape[0]), (0, 0)))
    S, K = a.shape
    N = w.shape[1]

    n_split = 2 if (N >= 512 and (N // 2) % 128 == 0) else 1
    TN = N // n_split

    if bias2d.shape[0] == 1:                                    # per-column bias
        b_spec = pl.BlockSpec((1, TN), lambda j: (0, j))
    else:                                                       # per-row bias
        b_spec = pl.BlockSpec((bias2d.shape[0], 1), lambda j: (0, 0))

    return pl.pallas_call(
        functools.partial(_mm_bias_act_kernel, act=act),
        out_shape=jax.ShapeDtypeStruct((S, N), jnp.float32),
        grid=(n_split,),
        in_specs=[
            pl.BlockSpec((S, K), lambda j: (0, 0)),
            pl.BlockSpec((K, TN), lambda j: (0, j)),
            b_spec,
        ],
        out_specs=pl.BlockSpec((S, TN), lambda j: (0, j)),
        compiler_params=pltpu.CompilerParams(
            dimension_semantics=("parallel",)),
    )(a, w, bias2d)


# -------- sub-pixel (phase) decomposition of ConvTranspose2d(4, 2, 1) ------ #
#
# For stride 2, kernel 4, padding 1:  oh = 2*ih - 1 + kh.  Splitting the
# output into parity phases oh = 2*p + r gives, per spatial axis,
#     r = 0:  y[2p]   = x[p]   * w[1] + x[p-1] * w[3]
#     r = 1:  y[2p+1] = x[p]   * w[2] + x[p+1] * w[0]
# i.e. each phase is a stride-1 2-tap filter over the *un-dilated* input.
# With a one-pixel zero-padded input and its 3x3-neighbourhood patches, all 4
# (rh, rw) phases come out of a single matmul with a (9*Cin, 4*Cout) weight
# matrix that is zero outside each phase's 2x2 taps.

# phase r -> ((patch offset a in 0..2, kernel tap k), ...) ; offset a reads x[p + a - 1]
_SUBPIXEL_TAPS = {0: ((0, 3), (1, 1)), 1: ((1, 2), (2, 0))}


def make_subpixel_weight_t(w_pt):
    """PyTorch ConvTranspose2d weight (Cin, Cout, 4, 4) -> np (4*Cout, 9*Cin)."""
    w = np.asarray(w_pt, np.float32)
    cin, cout, k, _ = w.shape
    assert k == 4
    w6 = np.zeros((3, 3, cin, 2, 2, cout), np.float32)   # (ah, aw, ci, rh, rw, co)
    for rh in (0, 1):
        for ah, kh in _SUBPIXEL_TAPS[rh]:
            for rw in (0, 1):
                for aw, kw in _SUBPIXEL_TAPS[rw]:
                    w6[ah, aw, :, rh, rw, :] = w[:, :, kh, kw]
    w_all = w6.reshape(9 * cin, 4 * cout)   # rows (ah,aw,ci), cols (rh,rw,co)
    return np.ascontiguousarray(w_all.T)    # transposed: (4*Cout, 9*Cin)


def subpixel_conv_transpose(x_t, w_all_t, b_col, act):
    """ConvTranspose2d(k=4, s=2, p=1) + bias + act on channel-major input.

    x_t: (Cin, B, H, W) f32  ->  (Cout, B, 2H, 2W) f32.
    """
    cin, B, H, W = x_t.shape
    cout = w_all_t.shape[0] // 4

    # 3x3-neighbourhood patches, built already transposed:
    # patches_t[(ah*3+aw)*Cin + ci, b*H*W + p*W + q] = xpad[ci, b, p+ah, q+aw]
    xpad = jnp.pad(x_t.astype(jnp.bfloat16), ((0, 0), (0, 0), (1, 1), (1, 1)))
    patches_t = jnp.stack(
        [xpad[:, :, ah:ah + H, aw:aw + W] for ah in range(3) for aw in range(3)],
        axis=0).reshape(9 * cin, B * H * W)

    # All 4 output phases in one lane-dense matmul: (4*Cout, B*H*W).
    y_t = matmul_bias_act(w_all_t, patches_t, b_col, act)

    # Interleave the phases back to a channel-major image (tiny XLA glue).
    y6 = y_t.reshape(2, 2, cout, B, H, W)           # (rh, rw, co, b, p, q)
    y6 = jnp.transpose(y6, (2, 3, 4, 0, 5, 1))      # (co, b, p, rh, q, rw)
    return y6.reshape(cout, B, 2 * H, 2 * W)


# ------------------------------ Generator --------------------------------- #

def init_generator_params(key, z_dim, nf=8, channels=3):
    """Deterministic synthetic parameters matching Generator.__init__ shapes
    (output_dim=64, normalize='none': ConvTranspose2d(bias=True) + ReLU/Tanh)."""
    depths = [z_dim, nf * 8, nf * 4, nf * 2, nf]
    in_depths = depths
    out_depths = depths[1:] + [channels]
    kernel_dim = [4, 4, 4, 4, 4]
    strides = [1, 2, 2, 2, 2]
    padding = [0, 1, 1, 1, 1]
    params = []
    n_layers = len(in_depths)
    for i in range(n_layers):
        key, kw_, kb_ = jax.random.split(key, 3)
        cin, cout, k = in_depths[i], out_depths[i], kernel_dim[i]
        w = jax.random.normal(kw_, (cin, cout, k, k), jnp.float32) * 0.05
        b = jax.random.normal(kb_, (cout,), jnp.float32) * 0.05
        params.append(dict(
            w=w, b=b, stride=strides[i], pad=padding[i],
            act="relu" if i < n_layers - 1 else "tanh"))
    return params


def prepare_params(params):
    """One-time conversion of PyTorch-layout weights into kernel-ready arrays
    (phase-packed / flattened, contraction dim padded to 128, cast to bf16)."""
    p0 = params[0]
    assert p0["stride"] == 1 and p0["pad"] == 0 and p0["w"].shape[2] == 4
    w0 = np.asarray(p0["w"], np.float32)                # (Cin, Cout, 4, 4)
    cin0, cout0, k0, _ = w0.shape
    # 1x1 input => layer 0 is a plain projection, columns = co*16 + oh*4 + ow.
    proj_w = w0.reshape(cin0, cout0 * k0 * k0)
    proj_w = np.pad(proj_w, ((0, _round_up(cin0, 128) - cin0), (0, 0)))
    proj_b = np.repeat(np.asarray(p0["b"], np.float32), k0 * k0)[None, :]

    ups = []
    for p in params[1:]:
        assert p["stride"] == 2 and p["pad"] == 1 and p["w"].shape[2] == 4
        w_t = make_subpixel_weight_t(p["w"])            # (4*Cout, 9*Cin)
        kpad = _round_up(w_t.shape[1], 128)
        w_t = np.pad(w_t, ((0, 0), (0, kpad - w_t.shape[1])))
        b_col = np.tile(np.asarray(p["b"], np.float32), 4)[:, None]
        ups.append((jnp.asarray(w_t, jnp.bfloat16), jnp.asarray(b_col, jnp.float32)))

    return (jnp.asarray(proj_w, jnp.bfloat16),
            jnp.asarray(proj_b, jnp.float32),
            tuple(ups))


@jax.jit
def generator_forward(prepared, z):
    """z: (B, z_dim) -> output (B, channels, 64, 64), matching PyTorch NCHW."""
    proj_w, proj_b, ups = prepared
    B = z.shape[0]
    cout0 = proj_w.shape[1] // 16

    # Layer 0: ConvTranspose2d(z_dim, nf*8, 4, 1, 0) on a 1x1 input == projection.
    y0 = matmul_bias_act(z.astype(jnp.bfloat16), proj_w, proj_b, "relu")  # (B, 16*cout0)
    x = jnp.transpose(y0.reshape(B, cout0, 4, 4), (1, 0, 2, 3))           # (C, B, 4, 4)

    # Layers 1..4: stride-2 ConvTranspose blocks (ReLU), final one with Tanh.
    n_up = len(ups)
    for i, (w_all_t, b_col) in enumerate(ups):
        act = "tanh" if i == n_up - 1 else "relu"
        x = subpixel_conv_transpose(x, w_all_t, b_col, act)

    return jnp.transpose(x, (1, 0, 2, 3))   # channel-major -> NCHW


# --------------------------- Pure-JAX reference ---------------------------- #

def _flip_to_hwio(w_pt):
    """(Cin, Cout, kH, kW) PyTorch ConvTranspose weight -> flipped HWIO."""
    return jnp.transpose(w_pt[:, :, ::-1, ::-1], (2, 3, 0, 1))


def _conv_transpose_ref(x_nhwc, w_pt, b, stride, pad, act):
    k = w_pt.shape[2]
    e = k - 1 - pad
    wf = _flip_to_hwio(w_pt)
    y = lax.conv_general_dilated(
        x_nhwc, wf, window_strides=(1, 1), padding=[(e, e), (e, e)],
        lhs_dilation=(stride, stride),
        dimension_numbers=("NHWC", "HWIO", "NHWC"))
    y = y + b[None, None, None, :]
    return jnp.maximum(y, 0.0) if act == "relu" else jnp.tanh(y)


def generator_reference(params, z):
    B, z_dim = z.shape
    x = z.reshape(B, 1, 1, z_dim)
    for p in params:
        x = _conv_transpose_ref(x, p["w"], p["b"], p["stride"], p["pad"], p["act"])
    return jnp.transpose(x, (0, 3, 1, 2))


# ---------------------------------- main ----------------------------------- #

if __name__ == "__main__":
    B, z_dim, nf, channels = 2, 16, 8, 3
    key = jax.random.PRNGKey(0)
    kz, kp = jax.random.split(key)
    z = jax.random.normal(kz, (B, z_dim), jnp.float32)
    params = init_generator_params(kp, z_dim, nf=nf, channels=channels)
    prepared = prepare_params(params)

    out = generator_forward(prepared, z)
    out = jax.block_until_ready(out)
    assert out.shape == (B, channels, 64, 64), out.shape

    ref = jax.block_until_ready(generator_reference(params, z))
    max_err = float(jnp.max(jnp.abs(out - ref)))
    assert max_err < 5e-2, f"max abs err {max_err}"

    print("KERNEL_OK")
</pallas_src>

<mosaic_0001>
module attributes {stable_mosaic.version = 11 : i64} {
  func.func @_mm_bias_act_kernel(%arg0: i32, %arg1: memref<2x128xbf16, #tpu.memory_space<vmem>>, %arg2: memref<128x512xbf16, #tpu.memory_space<vmem>>, %arg3: memref<1x512xf32, #tpu.memory_space<vmem>>, %arg4: memref<2x512xf32, #tpu.memory_space<vmem>>) attributes {dimension_semantics = [#tpu.dimension_semantics<parallel>], iteration_bounds = array<i64: 2>, scalar_prefetch = 0 : i64, scratch_operands = 0 : i64, tpu.core_type = #tpu.core_type<tc>, window_params = [{pipeline_mode = #tpu.pipeline_mode<synchronous>, transform_indices = @transform_0, window_bounds = array<i64: 2, 128>}, {transform_indices = @transform_1, window_bounds = array<i64: 128, 512>}, {transform_indices = @transform_2, window_bounds = array<i64: 1, 512>}, {transform_indices = @transform_3, window_bounds = array<i64: 2, 512>}]} {
    %c0 = arith.constant 0 : index
    %c0_0 = arith.constant 0 : index
    %0 = vector.load %arg1[%c0, %c0_0] : memref<2x128xbf16, #tpu.memory_space<vmem>>, vector<2x128xbf16>
    %c0_1 = arith.constant 0 : index
    %c0_2 = arith.constant 0 : index
    %1 = vector.load %arg2[%c0_1, %c0_2] : memref<128x512xbf16, #tpu.memory_space<vmem>>, vector<128x512xbf16>
    %cst = arith.constant dense<0.000000e+00> : vector<2x512xf32>
    %2 = tpu.matmul %0, %1, %cst {dimension_numbers = #tpu.dot_dimension_numbers<[1], [0], [0], [1], [0, 0, 1, 1], [], []>} : vector<2x128xbf16>, vector<128x512xbf16>, vector<2x512xf32> -> vector<2x512xf32>
    %c0_3 = arith.constant 0 : index
    %c0_4 = arith.constant 0 : index
    %3 = vector.load %arg3[%c0_3, %c0_4] : memref<1x512xf32, #tpu.memory_space<vmem>>, vector<1x512xf32>
    %4 = vector.broadcast %3 : vector<1x512xf32> to vector<2x512xf32>
    %5 = arith.addf %2, %4 : vector<2x512xf32>
    %cst_5 = arith.constant 0.000000e+00 : f32
    %6 = vector.broadcast %cst_5 : f32 to vector<2x512xf32>
    %7 = arith.maximumf %5, %6 : vector<2x512xf32>
    %c0_6 = arith.constant 0 : index
    %c0_7 = arith.constant 0 : index
    %8 = vector.load %arg4[%c0_6, %c0_7] : memref<2x512xf32, #tpu.memory_space<vmem>>, vector<2x512xf32>
    tpu.vector_store %arg4[%c0_6, %c0_7], %7 {strides = array<i32>} : memref<2x512xf32, #tpu.memory_space<vmem>>, vector<2x512xf32>,
    return
  }
  func.func @transform_0(%arg0: i32) -> (i32, i32) {
    %c0_i32 = arith.constant 0 : i32
    %c0_i32_0 = arith.constant 0 : i32
    %c0_i32_1 = arith.constant 0 : i32
    return %c0_i32, %c0_i32_0 : i32, i32
  }
  func.func @transform_1(%arg0: i32) -> (i32, i32) {
    %c0_i32 = arith.constant 0 : i32
    %c0_i32_0 = arith.constant 0 : i32
    return %c0_i32, %arg0 : i32, i32
  }
  func.func @transform_2(%arg0: i32) -> (i32, i32) {
    %c0_i32 = arith.constant 0 : i32
    %c0_i32_0 = arith.constant 0 : i32
    return %c0_i32, %arg0 : i32, i32
  }
  func.func @transform_3(%arg0: i32) -> (i32, i32) {
    %c0_i32 = arith.constant 0 : i32
    %c0_i32_0 = arith.constant 0 : i32
    return %c0_i32, %arg0 : i32, i32
  }
}

module attributes {stable_mosaic.version = 11 : i64} {
  func.func @_mm_bias_act_kernel(%arg0: i32, %arg1: memref<128x640xbf16, #tpu.memory_space<vmem>>, %arg2: memref<640x32xbf16, #tpu.memory_space<vmem>>, %arg3: memref<128x1xf32, #tpu.memory_space<vmem>>, %arg4: memref<128x32xf32, #tpu.memory_space<vmem>>) attributes {dimension_semantics = [#tpu.dimension_semantics<parallel>], iteration_bounds = array<i64: 1>, scalar_prefetch = 0 : i64, scratch_operands = 0 : i64, tpu.core_type = #tpu.core_type<tc>, window_params = [{pipeline_mode = #tpu.pipeline_mode<synchronous>, transform_indices = @transform_0, window_bounds = array<i64: 128, 640>}, {transform_indices = @transform_1, window_bounds = array<i64: 640, 32>}, {pipeline_mode = #tpu.pipeline_mode<synchronous>, transform_indices = @transform_2, window_bounds = array<i64: 128, 1>}, {transform_indices = @transform_3, window_bounds = array<i64: 128, 32>}]} {
    %c0 = arith.constant 0 : index
    %c0_0 = arith.constant 0 : index
    %0 = vector.load %arg1[%c0, %c0_0] : memref<128x640xbf16, #tpu.memory_space<vmem>>, vector<128x640xbf16>
    %c0_1 = arith.constant 0 : index
    %c0_2 = arith.constant 0 : index
    %1 = vector.load %arg2[%c0_1, %c0_2] : memref<640x32xbf16, #tpu.memory_space<vmem>>, vector<640x32xbf16>
    %cst = arith.constant dense<0.000000e+00> : vector<128x32xf32>
    %2 = tpu.matmul %0, %1, %cst {dimension_numbers = #tpu.dot_dimension_numbers<[1], [0], [0], [1], [0, 0, 1, 1], [], []>} : vector<128x640xbf16>, vector<640x32xbf16>, vector<128x32xf32> -> vector<128x32xf32>
    %c0_3 = arith.constant 0 : index
    %c0_4 = arith.constant 0 : index
    %3 = vector.load %arg3[%c0_3, %c0_4] : memref<128x1xf32, #tpu.memory_space<vmem>>, vector<128x1xf32>
    %4 = vector.broadcast %3 : vector<128x1xf32> to vector<128x32xf32>
    %5 = arith.addf %2, %4 : vector<128x32xf32>
    %cst_5 = arith.constant 0.000000e+00 : f32
    %6 = vector.broadcast %cst_5 : f32 to vector<128x32xf32>
    %7 = arith.maximumf %5, %6 : vector<128x32xf32>
    %c0_6 = arith.constant 0 : index
    %c0_7 = arith.constant 0 : index
    %8 = vector.load %arg4[%c0_6, %c0_7] : memref<128x32xf32, #tpu.memory_space<vmem>>, vector<128x32xf32>
    tpu.vector_store %arg4[%c0_6, %c0_7], %7 {strides = array<i32>} : memref<128x32xf32, #tpu.memory_space<vmem>>, vector<128x32xf32>,
    return
  }
  func.func @transform_0(%arg0: i32) -> (i32, i32) {
    %c0_i32 = arith.constant 0 : i32
    %c0_i32_0 = arith.constant 0 : i32
    %c0_i32_1 = arith.constant 0 : i32
    return %c0_i32, %c0_i32_0 : i32, i32
  }
  func.func @transform_1(%arg0: i32) -> (i32, i32) {
    %c0_i32 = arith.constant 0 : i32
    %c0_i32_0 = arith.constant 0 : i32
    return %c0_i32, %arg0 : i32, i32
  }
  func.func @transform_2(%arg0: i32) -> (i32, i32) {
    %c0_i32 = arith.constant 0 : i32
    %c0_i32_0 = arith.constant 0 : i32
    %c0_i32_1 = arith.constant 0 : i32
    return %c0_i32, %c0_i32_0 : i32, i32
  }
  func.func @transform_3(%arg0: i32) -> (i32, i32) {
    %c0_i32 = arith.constant 0 : i32
    %c0_i32_0 = arith.constant 0 : i32
    return %c0_i32, %arg0 : i32, i32
  }
}

module attributes {stable_mosaic.version = 11 : i64} {
  func.func @_mm_bias_act_kernel(%arg0: i32, %arg1: memref<64x384xbf16, #tpu.memory_space<vmem>>, %arg2: memref<384x128xbf16, #tpu.memory_space<vmem>>, %arg3: memref<64x1xf32, #tpu.memory_space<vmem>>, %arg4: memref<64x128xf32, #tpu.memory_space<vmem>>) attributes {dimension_semantics = [#tpu.dimension_semantics<parallel>], iteration_bounds = array<i64: 1>, scalar_prefetch = 0 : i64, scratch_operands = 0 : i64, tpu.core_type = #tpu.core_type<tc>, window_params = [{pipeline_mode = #tpu.pipeline_mode<synchronous>, transform_indices = @transform_0, window_bounds = array<i64: 64, 384>}, {transform_indices = @transform_1, window_bounds = array<i64: 384, 128>}, {pipeline_mode = #tpu.pipeline_mode<synchronous>, transform_indices = @transform_2, window_bounds = array<i64: 64, 1>}, {transform_indices = @transform_3, window_bounds = array<i64: 64, 128>}]} {
    %c0 = arith.constant 0 : index
    %c0_0 = arith.constant 0 : index
    %0 = vector.load %arg1[%c0, %c0_0] : memref<64x384xbf16, #tpu.memory_space<vmem>>, vector<64x384xbf16>
    %c0_1 = arith.constant 0 : index
    %c0_2 = arith.constant 0 : index
    %1 = vector.load %arg2[%c0_1, %c0_2] : memref<384x128xbf16, #tpu.memory_space<vmem>>, vector<384x128xbf16>
    %cst = arith.constant dense<0.000000e+00> : vector<64x128xf32>
    %2 = tpu.matmul %0, %1, %cst {dimension_numbers = #tpu.dot_dimension_numbers<[1], [0], [0], [1], [0, 0, 1, 1], [], []>} : vector<64x384xbf16>, vector<384x128xbf16>, vector<64x128xf32> -> vector<64x128xf32>
    %c0_3 = arith.constant 0 : index
    %c0_4 = arith.constant 0 : index
    %3 = vector.load %arg3[%c0_3, %c0_4] : memref<64x1xf32, #tpu.memory_space<vmem>>, vector<64x1xf32>
    %4 = vector.broadcast %3 : vector<64x1xf32> to vector<64x128xf32>
    %5 = arith.addf %2, %4 : vector<64x128xf32>
    %cst_5 = arith.constant 0.000000e+00 : f32
    %6 = vector.broadcast %cst_5 : f32 to vector<64x128xf32>
    %7 = arith.maximumf %5, %6 : vector<64x128xf32>
    %c0_6 = arith.constant 0 : index
    %c0_7 = arith.constant 0 : index
    %8 = vector.load %arg4[%c0_6, %c0_7] : memref<64x128xf32, #tpu.memory_space<vmem>>, vector<64x128xf32>
    tpu.vector_store %arg4[%c0_6, %c0_7], %7 {strides = array<i32>} : memref<64x128xf32, #tpu.memory_space<vmem>>, vector<64x128xf32>,
    return
  }
  func.func @transform_0(%arg0: i32) -> (i32, i32) {
    %c0_i32 = arith.constant 0 : i32
    %c0_i32_0 = arith.constant 0 : i32
    %c0_i32_1 = arith.constant 0 : i32
    return %c0_i32, %c0_i32_0 : i32, i32
  }
  func.func @transform_1(%arg0: i32) -> (i32, i32) {
    %c0_i32 = arith.constant 0 : i32
    %c0_i32_0 = arith.constant 0 : i32
    return %c0_i32, %arg0 : i32, i32
  }
  func.func @transform_2(%arg0: i32) -> (i32, i32) {
    %c0_i32 = arith.constant 0 : i32
    %c0_i32_0 = arith.constant 0 : i32
    %c0_i32_1 = arith.constant 0 : i32
    return %c0_i32, %c0_i32_0 : i32, i32
  }
  func.func @transform_3(%arg0: i32) -> (i32, i32) {
    %c0_i32 = arith.constant 0 : i32
    %c0_i32_0 = arith.constant 0 : i32
    return %c0_i32, %arg0 : i32, i32
  }
}

module attributes {stable_mosaic.version = 11 : i64} {
  func.func @_mm_bias_act_kernel(%arg0: i32, %arg1: memref<32x256xbf16, #tpu.memory_space<vmem>>, %arg2: memref<256x256xbf16, #tpu.memory_space<vmem>>, %arg3: memref<32x1xf32, #tpu.memory_space<vmem>>, %arg4: memref<32x256xf32, #tpu.memory_space<vmem>>) attributes {dimension_semantics = [#tpu.dimension_semantics<parallel>], iteration_bounds = array<i64: 2>, scalar_prefetch = 0 : i64, scratch_operands = 0 : i64, tpu.core_type = #tpu.core_type<tc>, window_params = [{pipeline_mode = #tpu.pipeline_mode<synchronous>, transform_indices = @transform_0, window_bounds = array<i64: 32, 256>}, {transform_indices = @transform_1, window_bounds = array<i64: 256, 256>}, {pipeline_mode = #tpu.pipeline_mode<synchronous>, transform_indices = @transform_2, window_bounds = array<i64: 32, 1>}, {transform_indices = @transform_3, window_bounds = array<i64: 32, 256>}]} {
    %c0 = arith.constant 0 : index
    %c0_0 = arith.constant 0 : index
    %0 = vector.load %arg1[%c0, %c0_0] : memref<32x256xbf16, #tpu.memory_space<vmem>>, vector<32x256xbf16>
    %c0_1 = arith.constant 0 : index
    %c0_2 = arith.constant 0 : index
    %1 = vector.load %arg2[%c0_1, %c0_2] : memref<256x256xbf16, #tpu.memory_space<vmem>>, vector<256x256xbf16>
    %cst = arith.constant dense<0.000000e+00> : vector<32x256xf32>
    %2 = tpu.matmul %0, %1, %cst {dimension_numbers = #tpu.dot_dimension_numbers<[1], [0], [0], [1], [0, 0, 1, 1], [], []>} : vector<32x256xbf16>, vector<256x256xbf16>, vector<32x256xf32> -> vector<32x256xf32>
    %c0_3 = arith.constant 0 : index
    %c0_4 = arith.constant 0 : index
    %3 = vector.load %arg3[%c0_3, %c0_4] : memref<32x1xf32, #tpu.memory_space<vmem>>, vector<32x1xf32>
    %4 = vector.broadcast %3 : vector<32x1xf32> to vector<32x256xf32>
    %5 = arith.addf %2, %4 : vector<32x256xf32>
    %cst_5 = arith.constant 0.000000e+00 : f32
    %6 = vector.broadcast %cst_5 : f32 to vector<32x256xf32>
    %7 = arith.maximumf %5, %6 : vector<32x256xf32>
    %c0_6 = arith.constant 0 : index
    %c0_7 = arith.constant 0 : index
    %8 = vector.load %arg4[%c0_6, %c0_7] : memref<32x256xf32, #tpu.memory_space<vmem>>, vector<32x256xf32>
    tpu.vector_store %arg4[%c0_6, %c0_7], %7 {strides = array<i32>} : memref<32x256xf32, #tpu.memory_space<vmem>>, vector<32x256xf32>,
    return
  }
  func.func @transform_0(%arg0: i32) -> (i32, i32) {
    %c0_i32 = arith.constant 0 : i32
    %c0_i32_0 = arith.constant 0 : i32
    %c0_i32_1 = arith.constant 0 : i32
    return %c0_i32, %c0_i32_0 : i32, i32
  }
  func.func @transform_1(%arg0: i32) -> (i32, i32) {
    %c0_i32 = arith.constant 0 : i32
    %c0_i32_0 = arith.constant 0 : i32
    return %c0_i32, %arg0 : i32, i32
  }
  func.func @transform_2(%arg0: i32) -> (i32, i32) {
    %c0_i32 = arith.constant 0 : i32
    %c0_i32_0 = arith.constant 0 : i32
    %c0_i32_1 = arith.constant 0 : i32
    return %c0_i32, %c0_i32_0 : i32, i32
  }
  func.func @transform_3(%arg0: i32) -> (i32, i32) {
    %c0_i32 = arith.constant 0 : i32
    %c0_i32_0 = arith.constant 0 : i32
    return %c0_i32, %arg0 : i32, i32
  }
}

module attributes {stable_mosaic.version = 11 : i64} {
  func.func @_mm_bias_act_kernel(%arg0: i32, %arg1: memref<12x128xbf16, #tpu.memory_space<vmem>>, %arg2: memref<128x1024xbf16, #tpu.memory_space<vmem>>, %arg3: memref<12x1xf32, #tpu.memory_space<vmem>>, %arg4: memref<12x1024xf32, #tpu.memory_space<vmem>>) attributes {dimension_semantics = [#tpu.dimension_semantics<parallel>], iteration_bounds = array<i64: 2>, scalar_prefetch = 0 : i64, scratch_operands = 0 : i64, tpu.core_type = #tpu.core_type<tc>, window_params = [{pipeline_mode = #tpu.pipeline_mode<synchronous>, transform_indices = @transform_0, window_bounds = array<i64: 12, 128>}, {transform_indices = @transform_1, window_bounds = array<i64: 128, 1024>}, {pipeline_mode = #tpu.pipeline_mode<synchronous>, transform_indices = @transform_2, window_bounds = array<i64: 12, 1>}, {transform_indices = @transform_3, window_bounds = array<i64: 12, 1024>}]} {
    %c0 = arith.constant 0 : index
    %c0_0 = arith.constant 0 : index
    %0 = vector.load %arg1[%c0, %c0_0] : memref<12x128xbf16, #tpu.memory_space<vmem>>, vector<12x128xbf16>
    %c0_1 = arith.constant 0 : index
    %c0_2 = arith.constant 0 : index
    %1 = vector.load %arg2[%c0_1, %c0_2] : memref<128x1024xbf16, #tpu.memory_space<vmem>>, vector<128x1024xbf16>
    %cst = arith.constant dense<0.000000e+00> : vector<12x1024xf32>
    %2 = tpu.matmul %0, %1, %cst {dimension_numbers = #tpu.dot_dimension_numbers<[1], [0], [0], [1], [0, 0, 1, 1], [], []>} : vector<12x128xbf16>, vector<128x1024xbf16>, vector<12x1024xf32> -> vector<12x1024xf32>
    %c0_3 = arith.constant 0 : index
    %c0_4 = arith.constant 0 : index
    %3 = vector.load %arg3[%c0_3, %c0_4] : memref<12x1xf32, #tpu.memory_space<vmem>>, vector<12x1xf32>
    %4 = vector.broadcast %3 : vector<12x1xf32> to vector<12x1024xf32>
    %5 = arith.addf %2, %4 : vector<12x1024xf32>
    %6 = math.tanh %5 : vector<12x1024xf32>
    %c0_5 = arith.constant 0 : index
    %c0_6 = arith.constant 0 : index
    %7 = vector.load %arg4[%c0_5, %c0_6] : memref<12x1024xf32, #tpu.memory_space<vmem>>, vector<12x1024xf32>
    tpu.vector_store %arg4[%c0_5, %c0_6], %6 {strides = array<i32>} : memref<12x1024xf32, #tpu.memory_space<vmem>>, vector<12x1024xf32>,
    return
  }
  func.func @transform_0(%arg0: i32) -> (i32, i32) {
    %c0_i32 = arith.constant 0 : i32
    %c0_i32_0 = arith.constant 0 : i32
    %c0_i32_1 = arith.constant 0 : i32
    return %c0_i32, %c0_i32_0 : i32, i32
  }
  func.func @transform_1(%arg0: i32) -> (i32, i32) {
    %c0_i32 = arith.constant 0 : i32
    %c0_i32_0 = arith.constant 0 : i32
    return %c0_i32, %arg0 : i32, i32
  }
  func.func @transform_2(%arg0: i32) -> (i32, i32) {
    %c0_i32 = arith.constant 0 : i32
    %c0_i32_0 = arith.constant 0 : i32
    %c0_i32_1 = arith.constant 0 : i32
    return %c0_i32, %c0_i32_0 : i32, i32
  }
  func.func @transform_3(%arg0: i32) -> (i32, i32) {
    %c0_i32 = arith.constant 0 : i32
    %c0_i32_0 = arith.constant 0 : i32
    return %c0_i32, %arg0 : i32, i32
  }
}

</mosaic_0001>

<bundles_post_ra>
// kernel: generator_forward.5
= control target key start
LH: loop header
LB: loop body
LE: loop exit
PB: predicated region body
PF: predicated region fallthrough
CT: control target
= control target key end

     0   :  { %8 = vsyncpa [#allocation3], 0  ;;  %s1107_s0 = inlined_call_operand.vmem [shape: bf16[2,128], index: 0, kind: input, shape index: {}]   ;;  %s1108_s1 = inlined_call_operand.hbm [shape: bf16[128,1024], index: 1, kind: input, shape index: {}]   ;;  %s1109_s2 = inlined_call_operand.hbm [shape: f32[1,1024], index: 2, kind: input, shape index: {}]   ;;  %s1110_s3 = inlined_call_operand.vmem [shape: f32[2,1024], index: 3, kind: output, shape index: {}]  }
   0x1   :  { %10 = vsyncpa [#allocation3 + $0x1], 0 }
   0x2   :  { %11 = vsyncpa [#allocation5], 0 }
   0x3   :  { %13 = vsyncpa [#allocation5 + $0x1], 0  ;;  %s922_s12 = smov 0   ;;  %s924_s13 = smov 0  }
   0x4   :  { %s926_s14 = smov 0   ;;  %s928_s15 = smov 0  }
   0x5 LB: > { %s647_s16 = sadd.s32 4294967295, %s893_s15   ;;  %s942_s17 = sadd.s32 1, %s893_s15   ;;  %s893_s15 = sphi %s928_s15, %s1120_s15   ;;  %s889_s14 = sphi %s926_s14, %s1119_s14   ;;  %s885_s13 = sphi %s924_s13, %s1118_s13   ;;  %s881_s12 = sphi %s922_s12, %s1117_s12  }
   0x6   : > { %s44_s18 = ssub.s32 %s893_s15, %s942_s17  ;;  %s47_s19 = sadd.s32 1, %s889_s14 }
   0x7   : > { %p45_p0 = scmp.eq.s32.totalorder %s44_s18, 0  ;;  %p54_p1 = scmp.ne.s32.totalorder %s889_s14, %s885_s13 }
   0x8   : > { %p55_p2 = scmp.eq.s32.totalorder %s893_s15, 0  ;;  %p60_p3 = scmp.ne.s32.totalorder %s885_s13, %s881_s12 }
   0x9   : > { %s952_s20 = scalar_select %p45_p0, %s889_s14, %s47_s19  }
   0xa   : > { %p56_p4 = por %p55_p2, %p54_p1  ;;  %p61_p5 = scmp.eq.s32.totalorder %s647_s16, 0 }
   0xb   : > { %p709_p6 = scmp.lt.s32.totalorder %s893_s15, 2  ;;  %s962_s22 = sand.u32 1, %s889_s14  }
   0xc   : > { %p957_p7 = por %p61_p5, %p60_p3  ;;  %s651_s23 = sshll.u32 %s962_s22, 8 }
   0xd   : > { %s696_s24 = sshll.u32 %s893_s15, 8  ;;  %s143_s28 = scalar_lea.vmem [#allocation2], %s651_s23 }
   0xe   : > { %s1112_s21 = scalar_select %p957_p7, 1, 0 }
   0xf   : > { %s969_s27 = scalar_lea.hbm %s1108_s1, %s696_s24  ;;  %s150_s29 = sshll.u32 %s143_s28, 4  ;;  %s971_s29 = int_to_ptr.vmem [resolvable:$true] %s150_s29 }
  0x10   : > { %p973_p8 = pnand %p709_p6, %p56_p4  ;;  %s140_s4 = scalar_lea.sflag [#allocation3], %s962_s22 }
  0x11   : > { %s795_s5 = scalar_lea.hbm %s969_s27, 4096  ;;  %s800_s8 = scalar_lea.hbm %s1108_s1, 8192 }
  0x12   : > { %p796_p9 = scmp.ne.s32.totalorder %s969_s27, %s795_s5  ;;  %p797_p10 = pneg %p973_p8 }
  0x13   : > { %p801_p13 = scmp.lt.u32.totalorder %s969_s27, %s1108_s1  ;;  %p802_p0 = scmp.lt.u32.totalorder %s800_s8, %s795_s5 }
  0x14   : > { %p798_p11 = pnand %p797_p10, %p796_p9  ;;  %p804_p2 = scmp.lt.u32.totalorder %s795_s5, %s969_s27 }
  0x15   : > { %p803_p1 = por %p802_p0, %p801_p13 }
  0x16   : > { %p799_p12 = pneg %p798_p11 }
  0x17   : > { %p805_p3 = por %p804_p2, %p803_p1 }
  0x19   : > { %p806_p4 = pnand %p805_p3, %p799_p12 }
  0x1b   : > { %809 = shalt.err (!%p806_p4)
}
  0x1c   : > { %s810_s11 = scalar_lea.vmem %s971_s29, 4096  ;;  %s895_s12 = smov [#allocation2]  }
  0x1d   : > { %p811_p5 = scmp.ne.s32.totalorder %s971_s29, %s810_s11  ;;  %s815_s18 = sshll.u32 %s895_s12, 4  ;;  %s816_s18 = int_to_ptr.vmem [resolvable:$false] %s815_s18 }
  0x1e   : > { %s817_s19 = scalar_lea.vmem %s816_s18, 8192  ;;  %p818_p11 = scmp.lt.s32.totalorder %s971_s29, %s816_s18 }
  0x1f   : > { %p813_p6 = pnand %p811_p5, %p797_p10  ;;  %p819_p13 = scmp.lt.s32.totalorder %s817_s19, %s810_s11 }
  0x21   : > { %p814_p9 = pneg %p813_p6  ;;  %p820_p0 = por %p819_p13, %p818_p11 }
  0x23   : > { %p821_p1 = pnand %p820_p0, %p814_p9 }
  0x25   : > { %824 = shalt.err (!%p821_p1)
}
  0x26   : > { %s896_s23 = smov 512   ;;  %s897_s24 = smov 256  }
  0x27   : > { %s898_s25 = smov 16   ;;  %p657_p12 = scmp.ge.s32.totalorder %s893_s15, 1 }
  0x28   : > { %705 = dma.hbm_to_vmem [thread:$0]  (!%p973_p8), %s969_s27, 4096, %s971_s29, %s140_s4, %s896_s23, %s897_s24, %s898_s25  }
  0x29   : > { %p177_p2 = scmp.lt.s32.totalorder %s893_s15, 3  ;;  %s654_s26 = sshll.u32 %s962_s22, 2 }
  0x2a   : > { %s697_s5 = sshll.u32 %s893_s15, 6  ;;  %s164_s6 = scalar_lea.vmem [#allocation4], %s654_s26 }
  0x2b   : > { %p1008_p3 = pnand %p657_p12, %p177_p2  ;;  %s172_s7 = sshll.u32 %s164_s6, 4  ;;  %s173_s7 = int_to_ptr.vmem [resolvable:$true] %s172_s7 }
  0x2c   : > { %s1016_s10 = scalar_lea.hbm %s1109_s2, %s697_s5  ;;  %s161_s27 = scalar_lea.sflag [#allocation5], %s962_s22 }
  0x2d   : > { %s1114_s28 = scalar_select %p1008_p3, 1, 0 }
  0x2e   : > { %s825_s29 = scalar_lea.hbm %s1016_s10, 64  ;;  %s830_s12 = scalar_lea.hbm %s1109_s2, 128 }
  0x2f   : > { %p826_p4 = scmp.ne.s32.totalorder %s1016_s10, %s825_s29  ;;  %p831_p9 = scmp.lt.u32.totalorder %s1016_s10, %s1109_s2 }
  0x30   : > { %p832_p11 = scmp.lt.u32.totalorder %s830_s12, %s825_s29  ;;  %p834_p0 = scmp.lt.u32.totalorder %s825_s29, %s1016_s10 }
  0x31   : > { %p828_p5 = pnand %p826_p4, %p797_p10 }
  0x32   : > { %p833_p13 = por %p832_p11, %p831_p9 }
  0x33   : > { %p829_p6 = pneg %p828_p5 }
  0x34   : > { %p835_p1 = por %p834_p0, %p833_p13 }
  0x36   : > { %p836_p12 = pnand %p835_p1, %p829_p6 }
  0x38   : > { %839 = shalt.err (!%p836_p12)
}
  0x39   : > { %s840_s22 = scalar_lea.vmem %s173_s7, 64  ;;  %s899_s23 = smov [#allocation4]  }
  0x3a   : > { %p841_p2 = scmp.ne.s32.totalorder %s173_s7, %s840_s22  ;;  %s845_s24 = sshll.u32 %s899_s23, 4  ;;  %s846_s24 = int_to_ptr.vmem [resolvable:$false] %s845_s24 }
  0x3b   : > { %s847_s25 = scalar_lea.vmem %s846_s24, 128  ;;  %p848_p7 = scmp.lt.s32.totalorder %s173_s7, %s846_s24 }
  0x3c   : > { %p843_p4 = pnand %p841_p2, %p797_p10  ;;  %p849_p3 = scmp.lt.s32.totalorder %s847_s25, %s840_s22 }
  0x3e   : > { %p844_p5 = pneg %p843_p4  ;;  %p850_p9 = por %p849_p3, %p848_p7 }
  0x40   : > { %p851_p11 = pnand %p850_p9, %p844_p5 }
  0x42   : > { %854 = shalt.err (!%p851_p11)
}
  0x43   : > { %708 = dma.hbm_to_vmem [thread:$0]  (!%p973_p8), %s1016_s10, 64, %s173_s7, %s161_s27  }
  0x44   : > { %p1115_p6 = scmp.ne.s32.totalorder %s1114_s28, 0 }
  0x45   : > { %s183_s26 = sand.u32 (!%p1115_p6), 1, %s885_s13   ;;  %p1116_p10 = scmp.ne.s32.totalorder (!%p1115_p6), %s1112_s21, 0 }
  0x46   : > { %181 = sbr.rel (%p1115_p6) target bundleno = 339 (0x153), region = 32  ;;  %s658_s5 = sshll.u32 (!%p1115_p6), %s183_s26, 8 }
  0x47   : > { %s184_s6 = scalar_lea.sflag (!%p1115_p6), [#allocation3], %s183_s26  ;;  %s1041_s8 = scalar_lea.vmem (!%p1115_p6), [#allocation2], %s658_s5 }
  0x4d   : > { %872 = dma.done.wait (%p1116_p10), %s184_s6, 4096  }
  0x4e   : > { %874 = vsyncadd (%p1116_p10), %s184_s6, 4294963200  ;;  %s659_s9 = sshll.u32 %s183_s26, 2  ;;  %s193_s30 = scalar_lea.sflag [#allocation5], %s183_s26 }
  0x4f   : > { %s1047_s29 = scalar_lea.vmem [#allocation4], %s659_s9 }
  0x50   : > { %876 = dma.done.wait (%p1116_p10), %s193_s30, 64  }
  0x51   : > { %878 = vsyncadd (%p1116_p10), %s193_s30, 4294967232  ;;  %v900_v0 = vmov 0   ;;  %v747_v1 = vld [vmem:[%s1041_s8 + $0x4] ss:$16 sps:$4 sm:$0xff]   ;;  %v749_v2 = vld [vmem:[%s1041_s8 + $0xc] ss:$16 sps:$4 sm:$0xff]   ;;  %v268_v34 = vlaneseq }
  0x52   : > { %480 = vmatprep.mubr.bf16.mxu0 %v900_v0  ;;  %521 = vmatprep.mubr.bf16.mxu1 %v900_v0  ;;  %v751_v3 = vld [vmem:[%s1041_s8] ss:$16 sps:$4 sm:$0xff]   ;;  %v752_v4 = vld [vmem:[%s1041_s8 + $0x8] ss:$16 sps:$4 sm:$0xff]   ;;  %v753_v5 = vld [vmem:[%s1041_s8 + $0x24] ss:$16 sps:$4 sm:$0xff]  }
  0x53   : > { %448 = vmatprep.subr.bf16.mxu0 %v747_v1  ;;  %489 = vmatprep.subr.bf16.mxu1 %v749_v2  ;;  %v755_v6 = vld [vmem:[%s1041_s8 + $0x2c] ss:$16 sps:$4 sm:$0xff]   ;;  %v757_v7 = vld [vmem:[%s1041_s8 + $0x20] ss:$16 sps:$4 sm:$0xff]   ;;  %v758_v8 = vld [vmem:[%s1041_s8 + $0x28] ss:$16 sps:$4 sm:$0xff]  }
  0x54   : > { %449 = vmatpush1.bf16.msra.mxu0 %v751_v3  ;;  %490 = vmatpush1.bf16.msra.mxu1 %v752_v4  ;;  %v759_v9 = vld [vmem:[%s1041_s8 + $0x44] ss:$16 sps:$4 sm:$0xff]   ;;  %v761_v10 = vld [vmem:[%s1041_s8 + $0x4c] ss:$16 sps:$4 sm:$0xff]   ;;  %v763_v11 = vld [vmem:[%s1041_s8 + $0x40] ss:$16 sps:$4 sm:$0xff]  }
  0x55   : > { %450 = vmatprep.subr.bf16.mxu0 %v753_v5  ;;  %491 = vmatprep.subr.bf16.mxu1 %v755_v6  ;;  %v764_v12 = vld [vmem:[%s1041_s8 + $0x48] ss:$16 sps:$4 sm:$0xff]   ;;  %v765_v13 = vld [vmem:[%s1041_s8 + $0x64] ss:$16 sps:$4 sm:$0xff]   ;;  %v767_v14 = vld [vmem:[%s1041_s8 + $0x6c] ss:$16 sps:$4 sm:$0xff]  }
  0x56   : > { %v769_v15 = vld [vmem:[%s1041_s8 + $0x60] ss:$16 sps:$4 sm:$0xff]   ;;  %v770_v16 = vld [vmem:[%s1041_s8 + $0x68] ss:$16 sps:$4 sm:$0xff]   ;;  %v771_v17 = vld [vmem:[%s1041_s8 + $0x84] ss:$16 sps:$4 sm:$0xff]  }
  0x57   : > { %v773_v18 = vld [vmem:[%s1041_s8 + $0x8c] ss:$16 sps:$4 sm:$0xff]   ;;  %v775_v19 = vld [vmem:[%s1041_s8 + $0x80] ss:$16 sps:$4 sm:$0xff]   ;;  %v776_v20 = vld [vmem:[%s1041_s8 + $0x88] ss:$16 sps:$4 sm:$0xff]  }
  0x58   : > { %451 = vmatpush1.bf16.msra.mxu0 %v757_v7  ;;  %492 = vmatpush1.bf16.msra.mxu1 %v758_v8  ;;  %v777_v21 = vld [vmem:[%s1041_s8 + $0xa4] ss:$16 sps:$4 sm:$0xff]   ;;  %v779_v22 = vld [vmem:[%s1041_s8 + $0xac] ss:$16 sps:$4 sm:$0xff]   ;;  %v781_v23 = vld [vmem:[%s1041_s8 + $0xa0] ss:$16 sps:$4 sm:$0xff]  }
  0x59   : > { %452 = vmatprep.subr.bf16.mxu0 %v759_v9  ;;  %493 = vmatprep.subr.bf16.mxu1 %v761_v10  ;;  %v782_v24 = vld [vmem:[%s1041_s8 + $0xa8] ss:$16 sps:$4 sm:$0xff]   ;;  %v783_v25 = vld [vmem:[%s1041_s8 + $0xc4] ss:$16 sps:$4 sm:$0xff]   ;;  %v785_v26 = vld [vmem:[%s1041_s8 + $0xcc] ss:$16 sps:$4 sm:$0xff]  }
  0x5a   : > { %v787_v27 = vld [vmem:[%s1041_s8 + $0xc0] ss:$16 sps:$4 sm:$0xff]   ;;  %v788_v28 = vld [vmem:[%s1041_s8 + $0xc8] ss:$16 sps:$4 sm:$0xff]   ;;  %v789_v29 = vld [vmem:[%s1041_s8 + $0xe4] ss:$16 sps:$4 sm:$0xff]  }
  0x5b   : > { %v791_v30 = vld [vmem:[%s1041_s8 + $0xec] ss:$16 sps:$4 sm:$0xff]   ;;  %v793_v31 = vld [vmem:[%s1041_s8 + $0xe0] ss:$16 sps:$4 sm:$0xff]   ;;  %v794_v32 = vld [vmem:[%s1041_s8 + $0xe8] ss:$16 sps:$4 sm:$0xff]  }
  0x5c   : > { %453 = vmatpush1.bf16.msra.mxu0 %v763_v11  ;;  %494 = vmatpush1.bf16.msra.mxu1 %v764_v12  ;;  %v233_v33 = vld [vmem:[%s1107_s0] sm:$0x1]  ;;  %v269_v35 = vshrl.u32 %v268_v34, 7  ;;  %s660_s7 = sshll.u32 %s647_s16, 2  ;;  %v901_v41 = vmov 1983009808  }
  0x5d   : > { %454 = vmatprep.subr.bf16.mxu0 %v765_v13  ;;  %495 = vmatprep.subr.bf16.mxu1 %v767_v14  ;;  %v266_v38 = vld [vmem:[%s1047_s29] sm:$0xf]  ;;  %v541_v42 = vunpack.c.l.s4 %v901_v41  ;;  %p227_p7 = scmp.lt.s32.totalorder %s660_s7, 7 }
  0x5e   : > { %v270_v36 = vsub.s32 0, %v269_v35  ;;  %v278_v37 = vsub.s32 2, %v269_v35  ;;  %v274_v39 = vsub.s32 1, %v269_v35  ;;  %v282_v40 = vsub.s32 3, %v269_v35 }
  0x5f   : > { %v542_v49 = vunpack.c.0.s8 %v541_v42  ;;  %s1122_s7 = smov (!%p227_p7, %s660_s7), 7 }
  0x60   : > { %455 = vmatpush1.bf16.msra.mxu0 %v769_v15  ;;  %496 = vmatpush1.bf16.msra.mxu1 %v770_v16  ;;  %v271_v43 = vrot.slane %v266_v38, %v270_v36  ;;  %v279_v44 = vrot.slane %v266_v38, %v278_v37  ;;  %v275_v45 = vrot.slane %v266_v38, %v274_v39  ;;  %s661_s15 = sshll.u32 %s1122_s7, 1 }
  0x61   : > { %456 = vmatprep.subr.bf16.mxu0 %v771_v17  ;;  %497 = vmatprep.subr.bf16.mxu1 %v773_v18  ;;  %v283_v46 = vrot.slane %v266_v38, %v282_v40  ;;  %v545_v63 = vsub.s32 %v542_v49, %v269_v35  ;;  %s230_s27 = scalar_lea.vmem %s1110_s3, %s661_s15 }
  0x64   : > { %457 = vmatpush1.bf16.msra.mxu0 %v775_v19  ;;  %498 = vmatpush1.bf16.msra.mxu1 %v776_v20 }
  0x65   : > { %458 = vmatprep.subr.bf16.mxu0 %v777_v21  ;;  %499 = vmatprep.subr.bf16.mxu1 %v779_v22 }
  0x68   : > { %459 = vmatpush1.bf16.msra.mxu0 %v781_v23  ;;  %500 = vmatpush1.bf16.msra.mxu1 %v782_v24 }
  0x69   : > { %460 = vmatprep.subr.bf16.mxu0 %v783_v25  ;;  %501 = vmatprep.subr.bf16.mxu1 %v785_v26 }
  0x6c   : > { %461 = vmatpush1.bf16.msra.mxu0 %v787_v27  ;;  %502 = vmatpush1.bf16.msra.mxu1 %v788_v28 }
  0x6d   : > { %462 = vmatprep.subr.bf16.mxu0 %v789_v29  ;;  %503 = vmatprep.subr.bf16.mxu1 %v791_v30 }
  0x70   : > { %463 = vmatpush1.bf16.msra.mxu0 %v793_v31  ;;  %504 = vmatpush1.bf16.msra.mxu1 %v794_v32 }
  0x73   : > { %481 = vmatmul.mubr.bf16.vlgmr.msra.gmra.mrb[0].mxu0 %v233_v33  ;;  %522 = vmatmul.mubr.bf16.vlgmr.msra.gmra.mrb[0].mxu1 %v233_v33 }
 0x146   : > { %v482_v47 = vpop.f32.mrb[0].mxu0  ;;  %v523_v48 = vpop.f32.mrb[0].mxu1 }
 0x147   : > { %v483_v50 = vadd.f32 %v482_v47, %v271_v43  ;;  %v524_v51 = vadd.f32 %v523_v48, %v279_v44  ;;  %v484_v52 = vpop.f32.mrb[1].mxu0  ;;  %v525_v53 = vpop.f32.mrb[1].mxu1 }
 0x148   : > { %v485_v54 = vadd.f32 %v484_v52, %v275_v45  ;;  %v526_v55 = vadd.f32 %v525_v53, %v283_v46  ;;  %v486_v56 = vpop.f32.mrb[2].mxu0  ;;  %v527_v57 = vpop.f32.mrb[2].mxu1 }
 0x149   : > { %v530_v58 = vmax.f32 %v483_v50, 0.0  ;;  %v532_v59 = vmax.f32 %v524_v51, 0.0  ;;  %v487_v60 = vpop.f32.mrb[3].mxu0  ;;  %v528_v61 = vpop.f32.mrb[3].mxu1 }
 0x14a   : > { %v531_v62 = vmax.f32 %v485_v54, 0.0  ;;  %v533_v0 = vmax.f32 %v526_v55, 0.0 }
 0x14c   : > { %v538_v1 = vcombine.low %v530_v58, %v531_v62  ;;  %v539_v2 = vcombine.low %v532_v59, %v533_v0 }
 0x14e   : > { %v546_v3 = vrot.slane %v538_v1, %v545_v63  ;;  %v553_v4 = vrot.slane %v539_v2, %v545_v63 }
 0x150   : > { %v554_v5 = vcombine.low %v546_v3, %v553_v4 }
 0x152   : > { %556 = vst [vmem:[%s230_s27] sm:$0xff] %v554_v5 }
 0x153 PF: > { %p16_p8 = scmp.ge.s32.totalorder %s942_s17, 4   ;;  %s1117_s12 = smov %s885_s13 }
 0x154   : > { %s1118_s13 = smov %s889_s14  ;;  %s1119_s14 = smov %s952_s20 }
 0x155   : > { %s1120_s15 = smov %s942_s17  ;;  %18 = sbr.rel (!%p16_p8) target bundleno = 5 (0x5), region = 85 }
 0x15c   :  { %579 = vsyncpa [#allocation3], 1 }
 0x15d   :  { %581 = vsyncpa [#allocation3 + $0x1], 1 }
 0x15e   :  { %582 = vsyncpa [#allocation5], 1 }
 0x15f   :  { %584 = vsyncpa [#allocation5 + $0x1], 1 }

// kernel: generator_forward.6
= control target key start
LH: loop header
LB: loop body
LE: loop exit
PB: predicated region body
PF: predicated region fallthrough
CT: control target
= control target key end

     0   :  { %v1386_v1 = vmov 0   ;;  %vm994_vm0 = vcmask 261120   ;;  %s1795_s1 = inlined_call_operand.vmem [shape: bf16[640,32], index: 1, kind: input, shape index: {}]   ;;  %s1796_s0 = inlined_call_operand.vmem [shape: bf16[128,640], index: 0, kind: input, shape index: {}]   ;;  %s1797_s2 = inlined_call_operand.vmem [shape: f32[128,1], index: 2, kind: input, shape index: {}]   ;;  %s1798_s3 = inlined_call_operand.vmem [shape: f32[128,32], index: 3, kind: output, shape index: {}]  }
   0x1   :  { %v1290_v0 = vld [vmem:[%s1795_s1 + $0x40] sm:$0xff]   ;;  %1288 = vset.pattern.permute.xlu0 %v1386_v1  ;;  %1289 = vset.pattern.permute.xlu1 %v1386_v1  ;;  %v1294_v5 = vld [vmem:[%s1795_s1 + $0x48] sm:$0xff]   ;;  %v1298_v9 = vld [vmem:[%s1795_s1 + $0x50] sm:$0xff]  }
   0x2   :  { %v1291_v2 = vld [vmem:[%s1795_s1 + $0xc0] sm:$0xff]   ;;  %1095 = vmatprep.subr.bf16.mxu0 %v1290_v0  ;;  %v1295_v6 = vld [vmem:[%s1795_s1 + $0xc8] sm:$0xff]   ;;  %v1299_v10 = vld [vmem:[%s1795_s1 + $0xd0] sm:$0xff]  }
   0x3   :  { %v1292_v3 = vld [vmem:[%s1795_s1] sm:$0xff]   ;;  %1159 = vmatprep.subr.bf16.mxu1 %v1291_v2  ;;  %v1296_v7 = vld [vmem:[%s1795_s1 + $0x8] sm:$0xff]   ;;  %v1300_v11 = vld [vmem:[%s1795_s1 + $0x10] sm:$0xff]  }
   0x4   :  { %v1293_v4 = vld [vmem:[%s1795_s1 + $0x80] sm:$0xff]   ;;  %1096 = vmatpush3.bf16.msra.mxu0 %v1292_v3  ;;  %v1297_v8 = vld [vmem:[%s1795_s1 + $0x88] sm:$0xff]   ;;  %v1301_v12 = vld [vmem:[%s1795_s1 + $0x90] sm:$0xff]  }
   0x5   :  { %1160 = vmatpush3.bf16.msra.mxu1 %v1293_v4  ;;  %1097 = vmatprep.subr.bf16.mxu0 %v1294_v5  ;;  %v1302_v13 = vld [vmem:[%s1795_s1 + $0x58] sm:$0xff]   ;;  %v1306_v17 = vld [vmem:[%s1795_s1 + $0x60] sm:$0xff]   ;;  %v1310_v21 = vld [vmem:[%s1795_s1 + $0x68] sm:$0xff]  }
   0x6   :  { %1161 = vmatprep.subr.bf16.mxu1 %v1295_v6  ;;  %v1303_v14 = vld [vmem:[%s1795_s1 + $0xd8] sm:$0xff]   ;;  %v1307_v18 = vld [vmem:[%s1795_s1 + $0xe0] sm:$0xff]   ;;  %v1311_v22 = vld [vmem:[%s1795_s1 + $0xe8] sm:$0xff]  }
   0x7   :  { %v1304_v15 = vld [vmem:[%s1795_s1 + $0x18] sm:$0xff]   ;;  %v1308_v19 = vld [vmem:[%s1795_s1 + $0x20] sm:$0xff]   ;;  %v1312_v23 = vld [vmem:[%s1795_s1 + $0x28] sm:$0xff]  }
   0x8   :  { %1098 = vmatpush3.bf16.msra.mxu0 %v1296_v7  ;;  %v1305_v16 = vld [vmem:[%s1795_s1 + $0x98] sm:$0xff]   ;;  %v1309_v20 = vld [vmem:[%s1795_s1 + $0xa0] sm:$0xff]   ;;  %v1313_v24 = vld [vmem:[%s1795_s1 + $0xa8] sm:$0xff]  }
   0x9   :  { %1162 = vmatpush3.bf16.msra.mxu1 %v1297_v8  ;;  %1099 = vmatprep.subr.bf16.mxu0 %v1298_v9  ;;  %v1314_v25 = vld [vmem:[%s1795_s1 + $0x70] sm:$0xff]   ;;  %v1318_v29 = vld [vmem:[%s1795_s1 + $0x78] sm:$0xff]   ;;  %v1327_v36 = vld [vmem:[%s1796_s0 + $0xc] ss:$20 sps:$4 sm:$0xff]  }
   0xa   :  { %1163 = vmatprep.subr.bf16.mxu1 %v1299_v10  ;;  %v1315_v26 = vld [vmem:[%s1795_s1 + $0xf0] sm:$0xff]   ;;  %v1319_v30 = vld [vmem:[%s1795_s1 + $0xf8] sm:$0xff]   ;;  %v1328_v37 = vld [vmem:[%s1795_s1 + $0x100] sm:$0xff]   ;;  %816 = vmatprep.mubr.bf16.mxu1 %v1327_v36 }
   0xb   :  { %v1316_v27 = vld [vmem:[%s1795_s1 + $0x30] sm:$0xff]   ;;  %v1320_v31 = vld [vmem:[%s1795_s1 + $0x38] sm:$0xff]   ;;  %v1329_v38 = vld [vmem:[%s1796_s0 + $0x2c] ss:$20 sps:$4 sm:$0xff]  }
   0xc   :  { %1100 = vmatpush3.bf16.msra.mxu0 %v1300_v11  ;;  %v1317_v28 = vld [vmem:[%s1795_s1 + $0xb0] sm:$0xff]   ;;  %v1321_v32 = vld [vmem:[%s1795_s1 + $0xb8] sm:$0xff]   ;;  %v1335_v40 = vld [vmem:[%s1795_s1 + $0x108] sm:$0xff]  }
   0xd   :  { %1164 = vmatpush3.bf16.msra.mxu1 %v1301_v12  ;;  %1101 = vmatprep.subr.bf16.mxu0 %v1302_v13  ;;  %v1322_v33 = vld [vmem:[%s1796_s0] ss:$20 sps:$4 sm:$0xff]   ;;  %v1324_v34 = vld [vmem:[%s1796_s0 + $0x4] ss:$20 sps:$4 sm:$0xff]   ;;  %v1325_v35 = vld [vmem:[%s1796_s0 + $0x8] ss:$20 sps:$4 sm:$0xff]  }
   0xe   :  { %1165 = vmatprep.subr.bf16.mxu1 %v1303_v14  ;;  %719 = vmatprep.mubr.bf16.mxu0 %v1324_v34  ;;  %v1331_v39 = vld [vmem:[%s1796_s0 + $0x34] ss:$20 sps:$4 sm:$0xff]   ;;  %v1334_v42 = vld [vmem:[%s1796_s0 + $0x30] ss:$20 sps:$4 sm:$0xff]   ;;  %v1349_v46 = vld [vmem:[%s1795_s1 + $0x118] sm:$0xff]  }
   0xf   :  { %v1333_v41 = vld [vmem:[%s1796_s0 + $0x28] ss:$20 sps:$4 sm:$0xff]   ;;  %v1342_v45 = vld [vmem:[%s1795_s1 + $0x110] sm:$0xff]   ;;  %v1341_v48 = vld [vmem:[%s1796_s0 + $0x58] ss:$20 sps:$4 sm:$0xff]  }
  0x10   :  { %1102 = vmatpush3.bf16.msra.mxu0 %v1304_v15  ;;  %v1336_v43 = vld [vmem:[%s1796_s0 + $0x54] ss:$20 sps:$4 sm:$0xff]   ;;  %v1338_v44 = vld [vmem:[%s1796_s0 + $0x5c] ss:$20 sps:$4 sm:$0xff]   ;;  %v1345_v50 = vld [vmem:[%s1796_s0 + $0x84] ss:$20 sps:$4 sm:$0xff]  }
  0x11   :  { %1166 = vmatpush3.bf16.msra.mxu1 %v1305_v16  ;;  %1103 = vmatprep.subr.bf16.mxu0 %v1306_v17  ;;  %v1340_v47 = vld [vmem:[%s1796_s0 + $0x50] ss:$20 sps:$4 sm:$0xff]   ;;  %v1363_v52 = vld [vmem:[%s1795_s1 + $0x128] sm:$0xff]   ;;  %v1348_v54 = vld [vmem:[%s1796_s0 + $0x80] ss:$20 sps:$4 sm:$0xff]  }
  0x12   :  { %1167 = vmatprep.subr.bf16.mxu1 %v1307_v18  ;;  %v1343_v49 = vld [vmem:[%s1796_s0 + $0x7c] ss:$20 sps:$4 sm:$0xff]   ;;  %v1356_v51 = vld [vmem:[%s1795_s1 + $0x120] sm:$0xff]   ;;  %v1347_v53 = vld [vmem:[%s1796_s0 + $0x78] ss:$20 sps:$4 sm:$0xff]  }
  0x13   :  { %v1350_v55 = vld [vmem:[%s1796_s0 + $0xa4] ss:$20 sps:$4 sm:$0xff]   ;;  %v1370_v56 = vld [vmem:[%s1795_s1 + $0x130] sm:$0xff]   ;;  %v1352_v57 = vld [vmem:[%s1796_s0 + $0xac] ss:$20 sps:$4 sm:$0xff]  }
  0x14   :  { %1104 = vmatpush3.bf16.msra.mxu0 %v1308_v19  ;;  %v1377_v58 = vld [vmem:[%s1795_s1 + $0x138] sm:$0xff]   ;;  %v1354_v59 = vld [vmem:[%s1796_s0 + $0xa0] ss:$20 sps:$4 sm:$0xff]   ;;  %v144_v1 = vld [vmem:[%s1797_s2 + $0x8] sm:$0xff] }
  0x15   :  { %1168 = vmatpush3.bf16.msra.mxu1 %v1309_v20  ;;  %1105 = vmatprep.subr.bf16.mxu0 %v1310_v21  ;;  %v1355_v60 = vld [vmem:[%s1796_s0 + $0xa8] ss:$20 sps:$4 sm:$0xff]   ;;  %v1357_v61 = vld [vmem:[%s1796_s0 + $0xcc] ss:$20 sps:$4 sm:$0xff]   ;;  %v145_v0 = vld [vmem:[%s1797_s2 + $0x10] sm:$0xff] }
  0x16   :  { %1169 = vmatprep.subr.bf16.mxu1 %v1311_v22  ;;  %v1359_v62 = vld [vmem:[%s1796_s0 + $0xd4] ss:$20 sps:$4 sm:$0xff]   ;;  %v143_v63 = vld [vmem:[%s1797_s2] sm:$0xff]  ;;  %171 = vperm.xlu1 %1289, %v145_v0   ;;  %v146_v3 = vld [vmem:[%s1797_s2 + $0x18] sm:$0xff] }
  0x17   :  { %161 = vperm.xlu0 %1288, %v143_v63   ;;  %v1361_v2 = vld [vmem:[%s1796_s0 + $0xc8] ss:$20 sps:$4 sm:$0xff]   ;;  %v1362_v4 = vld [vmem:[%s1796_s0 + $0xd0] ss:$20 sps:$4 sm:$0xff]   ;;  %v1369_v12 = vld [vmem:[%s1796_s0 + $0xf8] ss:$20 sps:$4 sm:$0xff]  }
  0x18   :  { %1106 = vmatpush3.bf16.msra.mxu0 %v1312_v23  ;;  %v1364_v5 = vld [vmem:[%s1796_s0 + $0xf4] ss:$20 sps:$4 sm:$0xff]   ;;  %v1366_v6 = vld [vmem:[%s1796_s0 + $0xfc] ss:$20 sps:$4 sm:$0xff]   ;;  %v147_v7 = vld [vmem:[%s1797_s2 + $0x20] sm:$0xff] }
  0x19   :  { %1170 = vmatpush3.bf16.msra.mxu1 %v1313_v24  ;;  %1107 = vmatprep.subr.bf16.mxu0 %v1314_v25  ;;  %v148_v8 = vld [vmem:[%s1797_s2 + $0x28] sm:$0xff]  ;;  %v149_v9 = vld [vmem:[%s1797_s2 + $0x30] sm:$0xff]  ;;  %v150_v11 = vld [vmem:[%s1797_s2 + $0x38] sm:$0xff] }
  0x1a   :  { %1171 = vmatprep.subr.bf16.mxu1 %v1315_v26  ;;  %176 = vperm.xlu1 %1289, %v146_v3   ;;  %v1368_v10 = vld [vmem:[%s1796_s0 + $0xf0] ss:$20 sps:$4 sm:$0xff]   ;;  %v152_v16 = vld [vmem:[%s1797_s2 + $0x48] sm:$0xff]  ;;  %v154_v19 = vld [vmem:[%s1797_s2 + $0x58] sm:$0xff] }
  0x1b   :  { %166 = vperm.xlu0 %1288, %v144_v1   ;;  %v1371_v13 = vld [vmem:[%s1796_s0 + $0x11c] ss:$20 sps:$4 sm:$0xff]   ;;  %v1373_v14 = vld [vmem:[%s1796_s0 + $0x124] ss:$20 sps:$4 sm:$0xff]   ;;  %v1376_v20 = vld [vmem:[%s1796_s0 + $0x120] ss:$20 sps:$4 sm:$0xff]  }
  0x1c   :  { %1108 = vmatpush3.bf16.msra.mxu0 %v1316_v27  ;;  %v151_v15 = vld [vmem:[%s1797_s2 + $0x40] sm:$0xff]  ;;  %v153_v17 = vld [vmem:[%s1797_s2 + $0x50] sm:$0xff]  ;;  %v1375_v18 = vld [vmem:[%s1796_s0 + $0x118] ss:$20 sps:$4 sm:$0xff]  }
  0x1d   :  { %1172 = vmatpush3.bf16.msra.mxu1 %v1317_v28  ;;  %1109 = vmatprep.subr.bf16.mxu0 %v1318_v29  ;;  %v1378_v21 = vld [vmem:[%s1796_s0 + $0x10] ss:$20 sps:$4 sm:$0xff]   ;;  %v156_v24 = vld [vmem:[%s1797_s2 + $0x68] sm:$0xff]  ;;  %v158_v27 = vld [vmem:[%s1797_s2 + $0x78] sm:$0xff] }
  0x1e   :  { %1173 = vmatprep.subr.bf16.mxu1 %v1319_v30  ;;  %186 = vperm.xlu1 %1289, %v148_v8   ;;  %v1379_v22 = vld [vmem:[%s1796_s0 + $0xb0] ss:$20 sps:$4 sm:$0xff]   ;;  %v1380_v26 = vld [vmem:[%s1796_s0 + $0x38] ss:$20 sps:$4 sm:$0xff]   ;;  %v1382_v29 = vld [vmem:[%s1796_s0 + $0x60] ss:$20 sps:$4 sm:$0xff]  }
  0x1f   :  { %181 = vperm.xlu0 %1288, %v147_v7   ;;  %v155_v23 = vld [vmem:[%s1797_s2 + $0x60] sm:$0xff]  ;;  %v157_v25 = vld [vmem:[%s1797_s2 + $0x70] sm:$0xff]  ;;  %v1381_v28 = vld [vmem:[%s1796_s0 + $0xd8] ss:$20 sps:$4 sm:$0xff]  }
  0x20   :  { %1110 = vmatpush3.bf16.msra.mxu0 %v1320_v31  ;;  %v1383_v30 = vld [vmem:[%s1796_s0 + $0x100] ss:$20 sps:$4 sm:$0xff]   ;;  %v1384_v31 = vld [vmem:[%s1796_s0 + $0x88] ss:$20 sps:$4 sm:$0xff]  }
  0x21   :  { %1174 = vmatpush3.bf16.msra.mxu1 %v1321_v32  ;;  %1239 = vmatprep.subr.bf16.mxu0 %v1328_v37  ;;  %v1385_v32 = vld [vmem:[%s1796_s0 + $0x128] ss:$20 sps:$4 sm:$0xff]  }
  0x22   :  { %1271 = vmatprep.subr.bf16.mxu1 %v1328_v37  ;;  %196 = vperm.xlu1 %1289, %v150_v11  }
  0x23   :  { %720 = vmatmul.mubr.bf16.vlgmr.msra.gmra.mrb[0].mxu0 %v1322_v33  ;;  %191 = vperm.xlu0 %1288, %v149_v9  }
  0x24   :  { %817 = vmatmul.mubr.bf16.vlgmr.msra.gmra.mrb[0].mxu1 %v1325_v35  ;;  %1240 = vmatpush3.bf16.msra.mxu0 %v1328_v37 }
  0x25   :  { %1279 = vmatpush3.bf16.msra.mxu1 %v1328_v37  ;;  %727 = vmatprep.mubr.bf16.mxu0 %v1329_v38 }
  0x26   :  { %824 = vmatprep.mubr.bf16.mxu1 %v1331_v39  ;;  %1241 = vmatprep.subr.bf16.mxu0 %v1335_v40 }
  0x27   :  { %1272 = vmatprep.subr.bf16.mxu1 %v1335_v40  ;;  %201 = vperm.xlu0 %1288, %v151_v15  }
  0x28   :  { %1242 = vmatpush3.bf16.msra.mxu0 %v1335_v40  ;;  %206 = vperm.xlu1 %1289, %v152_v16  }
  0x29   :  { %1280 = vmatpush3.bf16.msra.mxu1 %v1335_v40  ;;  %1243 = vmatprep.subr.bf16.mxu0 %v1342_v45 }
  0x2a   :  { %1273 = vmatprep.subr.bf16.mxu1 %v1342_v45 }
  0x2b   :  { %728 = vmatmul.mubr.bf16.gmra.mrb[4].mxu0 %v1333_v41  ;;  %211 = vperm.xlu0 %1288, %v153_v17  }
  0x2c   :  { %825 = vmatmul.mubr.bf16.gmra.mrb[4].mxu1 %v1334_v42  ;;  %735 = vmatprep.mubr.bf16.mxu0 %v1336_v43 }
  0x2d   :  { %832 = vmatprep.mubr.bf16.mxu1 %v1338_v44  ;;  %1244 = vmatpush3.bf16.msra.mxu0 %v1342_v45 }
  0x2e   :  { %1281 = vmatpush3.bf16.msra.mxu1 %v1342_v45  ;;  %1245 = vmatprep.subr.bf16.mxu0 %v1349_v46 }
  0x2f   :  { %1274 = vmatprep.subr.bf16.mxu1 %v1349_v46  ;;  %216 = vperm.xlu1 %1289, %v154_v19  }
  0x30   :  { %221 = vperm.xlu0 %1288, %v155_v23  }
  0x31   :  { %1246 = vmatpush3.bf16.msra.mxu0 %v1349_v46 }
  0x32   :  { %1282 = vmatpush3.bf16.msra.mxu1 %v1349_v46  ;;  %1247 = vmatprep.subr.bf16.mxu0 %v1356_v51 }
  0x33   :  { %736 = vmatmul.mubr.bf16.gmra.mrb[8].mxu0 %v1340_v47  ;;  %1275 = vmatprep.subr.bf16.mxu1 %v1356_v51 }
  0x34   :  { %833 = vmatmul.mubr.bf16.gmra.mrb[8].mxu1 %v1341_v48  ;;  %743 = vmatprep.mubr.bf16.mxu0 %v1343_v49 }
  0x35   :  { %840 = vmatprep.mubr.bf16.mxu1 %v1345_v50  ;;  %1248 = vmatpush3.bf16.msra.mxu0 %v1356_v51 }
  0x36   :  { %1283 = vmatpush3.bf16.msra.mxu1 %v1356_v51  ;;  %1249 = vmatprep.subr.bf16.mxu0 %v1363_v52 }
  0x37   :  { %1276 = vmatprep.subr.bf16.mxu1 %v1363_v52  ;;  %226 = vperm.xlu1 %1289, %v156_v24  }
  0x38   :  { %231 = vperm.xlu0 %1288, %v157_v25  }
  0x39   :  { %1250 = vmatpush3.bf16.msra.mxu0 %v1363_v52 }
  0x3a   :  { %1284 = vmatpush3.bf16.msra.mxu1 %v1363_v52  ;;  %1251 = vmatprep.subr.bf16.mxu0 %v1370_v56 }
  0x3b   :  { %744 = vmatmul.mubr.bf16.gmra.mrb[12].mxu0 %v1347_v53  ;;  %1277 = vmatprep.subr.bf16.mxu1 %v1370_v56 }
  0x3c   :  { %841 = vmatmul.mubr.bf16.gmra.mrb[12].mxu1 %v1348_v54  ;;  %751 = vmatprep.mubr.bf16.mxu0 %v1350_v55 }
  0x3d   :  { %848 = vmatprep.mubr.bf16.mxu1 %v1352_v57  ;;  %1252 = vmatpush3.bf16.msra.mxu0 %v1370_v56 }
  0x3e   :  { %1285 = vmatpush3.bf16.msra.mxu1 %v1370_v56  ;;  %1253 = vmatprep.subr.bf16.mxu0 %v1377_v58 }
  0x3f   :  { %1278 = vmatprep.subr.bf16.mxu1 %v1377_v58  ;;  %236 = vperm.xlu1 %1289, %v158_v27  }
  0x41   :  { %1254 = vmatpush3.bf16.msra.mxu0 %v1377_v58 }
  0x42   :  { %1286 = vmatpush3.bf16.msra.mxu1 %v1377_v58 }
  0x43   :  { %752 = vmatmul.mubr.bf16.gmra.mrb[16].mxu0 %v1354_v59 }
  0x44   :  { %849 = vmatmul.mubr.bf16.gmra.mrb[16].mxu1 %v1355_v60  ;;  %759 = vmatprep.mubr.bf16.mxu0 %v1357_v61 }
  0x45   :  { %856 = vmatprep.mubr.bf16.mxu1 %v1359_v62 }
  0x4b   :  { %760 = vmatmul.mubr.bf16.gmra.mrb[20].mxu0 %v1361_v2 }
  0x4c   :  { %857 = vmatmul.mubr.bf16.gmra.mrb[20].mxu1 %v1362_v4  ;;  %767 = vmatprep.mubr.bf16.mxu0 %v1364_v5 }
  0x4d   :  { %864 = vmatprep.mubr.bf16.mxu1 %v1366_v6 }
  0x53   :  { %768 = vmatmul.mubr.bf16.gmra.mrb[24].mxu0 %v1368_v10 }
  0x54   :  { %865 = vmatmul.mubr.bf16.gmra.mrb[24].mxu1 %v1369_v12  ;;  %775 = vmatprep.mubr.bf16.mxu0 %v1371_v13 }
  0x55   :  { %872 = vmatprep.mubr.bf16.mxu1 %v1373_v14 }
  0x5b   :  { %776 = vmatmul.mubr.bf16.gmra.mrb[28].mxu0 %v1375_v18 }
  0x5c   :  { %873 = vmatmul.mubr.bf16.gmra.mrb[28].mxu1 %v1376_v20  ;;  %1255 = vmatprep.mubr.bf16.mxu0 %v1378_v21 }
  0x5d   :  { %1263 = vmatprep.mubr.bf16.mxu1 %v1379_v22 }
  0x63   :  { %1256 = vmatmul.mubr.bf16.vlgmr.msra.gmra.mrb[32].mxu0 %v1380_v26 }
  0x64   :  { %1264 = vmatmul.mubr.bf16.vlgmr.msra.gmra.mrb[32].mxu1 %v1381_v28  ;;  %1259 = vmatprep.mubr.bf16.mxu0 %v1382_v29 }
  0x65   :  { %1267 = vmatprep.mubr.bf16.mxu1 %v1383_v30 }
  0x6b   :  { %1260 = vmatmul.mubr.bf16.gmra.mrb[36].mxu0 %v1384_v31 }
  0x6c   :  { %1268 = vmatmul.mubr.bf16.gmra.mrb[36].mxu1 %v1385_v32 }
  0x95   :  { %v172_v34 = vpop.permute.xlu1 %171 }
  0x96   :  { %v162_v33 = vpop.permute.xlu0 %161 }
  0x99   :  { %v177_v52 = vpop.permute.xlu1 %176 }
  0x9a   :  { %v167_v36 = vpop.permute.xlu0 %166 }
  0x9d   :  { %v187_v6 = vpop.permute.xlu1 %186 }
  0x9e   :  { %v182_v4 = vpop.permute.xlu0 %181 }
  0xa2   :  { %v192_v23 = vpop.permute.xlu0 %191 }
  0xf6   :  { %v1111_v35 = vpop.f32.mrb[0].mxu0 }
  0xf7   :  { %v1175_v37 = vpop.f32.mrb[0].mxu1  ;;  %v1112_v38 = vpop.f32.mrb[1].mxu0 }
  0xf8   :  { %v1113_v39 = vadd.f32 %v1112_v38, %v1111_v35  ;;  %v1176_v40 = vpop.f32.mrb[1].mxu1  ;;  %v1114_v41 = vpop.f32.mrb[2].mxu0 }
  0xf9   :  { %v1177_v42 = vadd.f32 %v1176_v40, %v1175_v37  ;;  %v1178_v43 = vpop.f32.mrb[2].mxu1  ;;  %v1115_v44 = vpop.f32.mrb[3].mxu0 }
  0xfa   :  { %v722_v45 = vadd.f32 %v1113_v39, %v162_v33  ;;  %v1116_v46 = vadd.f32 %v1115_v44, %v1114_v41  ;;  %v1179_v47 = vpop.f32.mrb[3].mxu1  ;;  %v197_v37 = vpop.permute.xlu1 %196 }
  0xfb   :  { %v1180_v48 = vadd.f32 %v1179_v47, %v1178_v43  ;;  %v202_v40 = vpop.permute.xlu0 %201 }
  0xfc   :  { %v725_v49 = vadd.f32 %v1116_v46, %v167_v36  ;;  %v1695_v50 = vadd.f32 %v1177_v42, %v722_v45 }
  0xfe   :  { %v1117_v51 = vpop.f32.mrb[4].mxu0  ;;  %v1697_v53 = vadd.f32 %v1180_v48, %v725_v49 }
  0xff   :  { %v1181_v54 = vpop.f32.mrb[4].mxu1  ;;  %v1118_v55 = vpop.f32.mrb[5].mxu0 }
 0x100   :  { %v1119_v56 = vadd.f32 %v1118_v55, %v1117_v51  ;;  %v1182_v57 = vpop.f32.mrb[5].mxu1  ;;  %v1120_v58 = vpop.f32.mrb[6].mxu0 }
 0x101   :  { %v1183_v59 = vadd.f32 %v1182_v57, %v1181_v54  ;;  %v1184_v60 = vpop.f32.mrb[6].mxu1  ;;  %v1121_v61 = vpop.f32.mrb[7].mxu0 }
 0x102   :  { %v730_v62 = vadd.f32 %v1119_v56, %v172_v34  ;;  %v1122_v63 = vadd.f32 %v1121_v61, %v1120_v58  ;;  %v1185_v0 = vpop.f32.mrb[7].mxu1  ;;  %v207_v56 = vpop.permute.xlu1 %206 }
 0x103   :  { %v1186_v1 = vadd.f32 %v1185_v0, %v1184_v60  ;;  %v212_v60 = vpop.permute.xlu0 %211 }
 0x104   :  { %v733_v2 = vadd.f32 %v1122_v63, %v177_v52  ;;  %v1699_v3 = vadd.f32 %v1183_v59, %v730_v62 }
 0x106   :  { %v1123_v5 = vpop.f32.mrb[8].mxu0  ;;  %v1701_v7 = vadd.f32 %v1186_v1, %v733_v2 }
 0x107   :  { %v1187_v8 = vpop.f32.mrb[8].mxu1  ;;  %v1124_v9 = vpop.f32.mrb[9].mxu0 }
 0x108   :  { %v1125_v10 = vadd.f32 %v1124_v9, %v1123_v5  ;;  %v1188_v11 = vpop.f32.mrb[9].mxu1  ;;  %v1126_v12 = vpop.f32.mrb[10].mxu0 }
 0x109   :  { %v1189_v13 = vadd.f32 %v1188_v11, %v1187_v8  ;;  %v1190_v14 = vpop.f32.mrb[10].mxu1  ;;  %v1127_v15 = vpop.f32.mrb[11].mxu0 }
 0x10a   :  { %v738_v16 = vadd.f32 %v1125_v10, %v182_v4  ;;  %v1128_v17 = vadd.f32 %v1127_v15, %v1126_v12  ;;  %v1191_v18 = vpop.f32.mrb[11].mxu1  ;;  %v217_v12 = vpop.permute.xlu1 %216 }
 0x10b   :  { %v1192_v19 = vadd.f32 %v1191_v18, %v1190_v14 }
 0x10c   :  { %v741_v20 = vadd.f32 %v1128_v17, %v187_v6  ;;  %v1703_v21 = vadd.f32 %v1189_v13, %v738_v16  ;;  %v222_v16 = vpop.permute.xlu0 %221 }
 0x10e   :  { %v1129_v22 = vpop.f32.mrb[12].mxu0  ;;  %v1705_v24 = vadd.f32 %v1192_v19, %v741_v20 }
 0x10f   :  { %v1193_v25 = vpop.f32.mrb[12].mxu1  ;;  %v1130_v26 = vpop.f32.mrb[13].mxu0 }
 0x110   :  { %v1131_v27 = vadd.f32 %v1130_v26, %v1129_v22  ;;  %v1194_v28 = vpop.f32.mrb[13].mxu1  ;;  %v1132_v29 = vpop.f32.mrb[14].mxu0 }
 0x111   :  { %v1195_v30 = vadd.f32 %v1194_v28, %v1193_v25  ;;  %v1196_v31 = vpop.f32.mrb[14].mxu1  ;;  %v1133_v32 = vpop.f32.mrb[15].mxu0 }
 0x112   :  { %v746_v33 = vadd.f32 %v1131_v27, %v192_v23  ;;  %v1134_v34 = vadd.f32 %v1133_v32, %v1132_v29  ;;  %v1197_v35 = vpop.f32.mrb[15].mxu1  ;;  %v227_v32 = vpop.permute.xlu1 %226 }
 0x113   :  { %v1198_v36 = vadd.f32 %v1197_v35, %v1196_v31 }
 0x114   :  { %v749_v38 = vadd.f32 %v1134_v34, %v197_v37  ;;  %v1707_v39 = vadd.f32 %v1195_v30, %v746_v33 }
 0x116   :  { %v1135_v41 = vpop.f32.mrb[16].mxu0  ;;  %v1709_v42 = vadd.f32 %v1198_v36, %v749_v38  ;;  %v232_v36 = vpop.permute.xlu0 %231 }
 0x117   :  { %v1199_v43 = vpop.f32.mrb[16].mxu1  ;;  %v1136_v44 = vpop.f32.mrb[17].mxu0 }
 0x118   :  { %v1137_v45 = vadd.f32 %v1136_v44, %v1135_v41  ;;  %v1200_v46 = vpop.f32.mrb[17].mxu1  ;;  %v1138_v47 = vpop.f32.mrb[18].mxu0 }
 0x119   :  { %v1201_v48 = vadd.f32 %v1200_v46, %v1199_v43  ;;  %v1202_v49 = vpop.f32.mrb[18].mxu1  ;;  %v1139_v51 = vpop.f32.mrb[19].mxu0 }
 0x11a   :  { %v754_v52 = vadd.f32 %v1137_v45, %v202_v40  ;;  %v1140_v54 = vadd.f32 %v1139_v51, %v1138_v47  ;;  %v1203_v55 = vpop.f32.mrb[19].mxu1 }
 0x11b   :  { %v1204_v57 = vadd.f32 %v1203_v55, %v1202_v49 }
 0x11c   :  { %v757_v58 = vadd.f32 %v1140_v54, %v207_v56  ;;  %v1711_v59 = vadd.f32 %v1201_v48, %v754_v52  ;;  %v237_v54 = vpop.permute.xlu1 %236 }
 0x11e   :  { %v1141_v61 = vpop.f32.mrb[20].mxu0  ;;  %v1713_v62 = vadd.f32 %v1204_v57, %v757_v58 }
 0x11f   :  { %v1205_v63 = vpop.f32.mrb[20].mxu1  ;;  %v1142_v0 = vpop.f32.mrb[21].mxu0 }
 0x120   :  { %v1143_v1 = vadd.f32 %v1142_v0, %v1141_v61  ;;  %v1206_v2 = vpop.f32.mrb[21].mxu1  ;;  %v1144_v4 = vpop.f32.mrb[22].mxu0 }
 0x121   :  { %v1207_v5 = vadd.f32 %v1206_v2, %v1205_v63  ;;  %v1208_v6 = vpop.f32.mrb[22].mxu1  ;;  %v1145_v8 = vpop.f32.mrb[23].mxu0 }
 0x122   :  { %v762_v9 = vadd.f32 %v1143_v1, %v212_v60  ;;  %v1146_v10 = vadd.f32 %v1145_v8, %v1144_v4  ;;  %v1209_v11 = vpop.f32.mrb[23].mxu1 }
 0x123   :  { %v1210_v13 = vadd.f32 %v1209_v11, %v1208_v6 }
 0x124   :  { %v765_v14 = vadd.f32 %v1146_v10, %v217_v12  ;;  %v859_v15 = vadd.f32 %v1207_v5, %v762_v9 }
 0x126   :  { %v1147_v17 = vpop.f32.mrb[24].mxu0  ;;  %v862_v18 = vadd.f32 %v1210_v13, %v765_v14 }
 0x127   :  { %v1211_v19 = vpop.f32.mrb[24].mxu1  ;;  %v1148_v20 = vpop.f32.mrb[25].mxu0 }
 0x128   :  { %v1149_v22 = vadd.f32 %v1148_v20, %v1147_v17  ;;  %v1212_v23 = vpop.f32.mrb[25].mxu1  ;;  %v1150_v25 = vpop.f32.mrb[26].mxu0 }
 0x129   :  { %v1213_v26 = vadd.f32 %v1212_v23, %v1211_v19  ;;  %v1214_v27 = vpop.f32.mrb[26].mxu1  ;;  %v1151_v28 = vpop.f32.mrb[27].mxu0 }
 0x12a   :  { %v770_v29 = vadd.f32 %v1149_v22, %v222_v16  ;;  %v1152_v30 = vadd.f32 %v1151_v28, %v1150_v25  ;;  %v1215_v31 = vpop.f32.mrb[27].mxu1 }
 0x12b   :  { %v1216_v33 = vadd.f32 %v1215_v31, %v1214_v27 }
 0x12c   :  { %v773_v34 = vadd.f32 %v1152_v30, %v227_v32  ;;  %v1715_v35 = vadd.f32 %v1213_v26, %v770_v29 }
 0x12e   :  { %v1153_v37 = vpop.f32.mrb[28].mxu0  ;;  %v1717_v38 = vadd.f32 %v1216_v33, %v773_v34 }
 0x12f   :  { %v1217_v40 = vpop.f32.mrb[28].mxu1  ;;  %v1154_v41 = vpop.f32.mrb[29].mxu0 }
 0x130   :  { %v1155_v43 = vadd.f32 %v1154_v41, %v1153_v37  ;;  %v1218_v44 = vpop.f32.mrb[29].mxu1  ;;  %v1156_v45 = vpop.f32.mrb[30].mxu0 }
 0x131   :  { %v1219_v46 = vadd.f32 %v1218_v44, %v1217_v40  ;;  %v1220_v47 = vpop.f32.mrb[30].mxu1  ;;  %v1157_v48 = vpop.f32.mrb[31].mxu0 }
 0x132   :  { %v778_v49 = vadd.f32 %v1155_v43, %v232_v36  ;;  %v1158_v51 = vadd.f32 %v1157_v48, %v1156_v45  ;;  %v1221_v52 = vpop.f32.mrb[31].mxu1 }
 0x133   :  { %v1222_v55 = vadd.f32 %v1221_v52, %v1220_v47 }
 0x134   :  { %v781_v56 = vadd.f32 %v1158_v51, %v237_v54  ;;  %v875_v57 = vadd.f32 %v1219_v46, %v778_v49 }
 0x136   :  { %v1257_v58 = vpop.f32.mrb[32].mxu0  ;;  %v878_v60 = vadd.f32 %v1222_v55, %v781_v56 }
 0x137   :  { %v924_v61 = vadd.f32 %v1257_v58, %v1699_v3  ;;  %v1265_v63 = vpop.f32.mrb[32].mxu1  ;;  %v915_v0 = vpop.f32.mrb[33].mxu0 }
 0x138   :  { %v956_v1 = vadd.f32 %v1265_v63, %v859_v15  ;;  %v916_v2 = vadd.f32 %v915_v0, %v1695_v50  ;;  %v947_v4 = vpop.f32.mrb[33].mxu1  ;;  %v1258_v5 = vpop.f32.mrb[34].mxu0 }
 0x139   :  { %v980_v6 = vmax.f32 %v924_v61, 0.0  ;;  %v948_v8 = vadd.f32 %v947_v4, %v1711_v59  ;;  %v927_v9 = vadd.f32 %v1258_v5, %v1701_v7  ;;  %v1266_v10 = vpop.f32.mrb[34].mxu1  ;;  %v918_v11 = vpop.f32.mrb[35].mxu0 }
 0x13a   :  { %v988_v12 = vmax.f32 %v956_v1, 0.0  ;;  %v978_v13 = vmax.f32 %v916_v2, 0.0  ;;  %v959_v14 = vadd.f32 %v1266_v10, %v862_v18  ;;  %v919_v3 = vadd.f32 %v918_v11, %v1697_v53  ;;  %v950_v16 = vpop.f32.mrb[35].mxu1 }
 0x13b   :  { %997 = vst.msk [vmem:[%s1798_s3 + $0x10] sm:$0xff] %vm994_vm0, %v980_v6  ;;  %v986_v50 = vmax.f32 %v948_v8, 0.0  ;;  %v981_v15 = vmax.f32 %v927_v9, 0.0  ;;  %v951_v17 = vadd.f32 %v950_v16, %v1713_v62 }
 0x13c   :  { %1005 = vst.msk [vmem:[%s1798_s3 + $0x50] sm:$0xff] %vm994_vm0, %v988_v12  ;;  %995 = vst.msk [vmem:[%s1798_s3] sm:$0xff] %vm994_vm0, %v978_v13  ;;  %v989_v53 = vmax.f32 %v959_v14, 0.0  ;;  %v979_v7 = vmax.f32 %v919_v3, 0.0 }
 0x13d   :  { %1003 = vst.msk [vmem:[%s1798_s3 + $0x40] sm:$0xff] %vm994_vm0, %v986_v50  ;;  %998 = vst.msk [vmem:[%s1798_s3 + $0x18] sm:$0xff] %vm994_vm0, %v981_v15  ;;  %v987_v59 = vmax.f32 %v951_v17, 0.0 }
 0x13e   :  { %1006 = vst.msk [vmem:[%s1798_s3 + $0x58] sm:$0xff] %vm994_vm0, %v989_v53  ;;  %996 = vst.msk [vmem:[%s1798_s3 + $0x8] sm:$0xff] %vm994_vm0, %v979_v7  ;;  %v1261_v62 = vpop.f32.mrb[36].mxu0 }
 0x13f   :  { %1004 = vst.msk [vmem:[%s1798_s3 + $0x48] sm:$0xff] %vm994_vm0, %v987_v59  ;;  %v940_v18 = vadd.f32 %v1261_v62, %v1707_v39  ;;  %v1269_v19 = vpop.f32.mrb[36].mxu1  ;;  %v931_v20 = vpop.f32.mrb[37].mxu0 }
 0x140   :  { %v972_v22 = vadd.f32 %v1269_v19, %v875_v57  ;;  %v932_v23 = vadd.f32 %v931_v20, %v1703_v21  ;;  %v963_v25 = vpop.f32.mrb[37].mxu1  ;;  %v1262_v26 = vpop.f32.mrb[38].mxu0 }
 0x141   :  { %v984_v27 = vmax.f32 %v940_v18, 0.0  ;;  %v964_v28 = vadd.f32 %v963_v25, %v1715_v35  ;;  %v943_v29 = vadd.f32 %v1262_v26, %v1709_v42  ;;  %v1270_v30 = vpop.f32.mrb[38].mxu1  ;;  %v934_v31 = vpop.f32.mrb[39].mxu0 }
 0x142   :  { %v992_v32 = vmax.f32 %v972_v22, 0.0  ;;  %v982_v33 = vmax.f32 %v932_v23, 0.0  ;;  %v975_v34 = vadd.f32 %v1270_v30, %v878_v60  ;;  %v935_v36 = vadd.f32 %v934_v31, %v1705_v24  ;;  %v966_v39 = vpop.f32.mrb[39].mxu1 }
 0x143   :  { %1001 = vst.msk [vmem:[%s1798_s3 + $0x30] sm:$0xff] %vm994_vm0, %v984_v27  ;;  %v990_v21 = vmax.f32 %v964_v28, 0.0  ;;  %v985_v37 = vmax.f32 %v943_v29, 0.0  ;;  %v967_v40 = vadd.f32 %v966_v39, %v1717_v38 }
 0x144   :  { %1009 = vst.msk [vmem:[%s1798_s3 + $0x70] sm:$0xff] %vm994_vm0, %v992_v32  ;;  %999 = vst.msk [vmem:[%s1798_s3 + $0x20] sm:$0xff] %vm994_vm0, %v982_v33  ;;  %v993_v24 = vmax.f32 %v975_v34, 0.0  ;;  %v983_v42 = vmax.f32 %v935_v36, 0.0 }
 0x145   :  { %1007 = vst.msk [vmem:[%s1798_s3 + $0x60] sm:$0xff] %vm994_vm0, %v990_v21  ;;  %1002 = vst.msk [vmem:[%s1798_s3 + $0x38] sm:$0xff] %vm994_vm0, %v985_v37  ;;  %v991_v35 = vmax.f32 %v967_v40, 0.0 }
 0x146   :  { %1010 = vst.msk [vmem:[%s1798_s3 + $0x78] sm:$0xff] %vm994_vm0, %v993_v24  ;;  %1000 = vst.msk [vmem:[%s1798_s3 + $0x28] sm:$0xff] %vm994_vm0, %v983_v42 }
 0x147   :  { %1008 = vst.msk [vmem:[%s1798_s3 + $0x68] sm:$0xff] %vm994_vm0, %v991_v35 }

// kernel: generator_forward.7
= control target key start
LH: loop header
LB: loop body
LE: loop exit
PB: predicated region body
PF: predicated region fallthrough
CT: control target
= control target key end

     0   :  { %v640_v1 = vmov 0   ;;  %s817_s1 = inlined_call_operand.vmem [shape: bf16[384,128], index: 1, kind: input, shape index: {}]   ;;  %s818_s0 = inlined_call_operand.vmem [shape: bf16[64,384], index: 0, kind: input, shape index: {}]   ;;  %s819_s2 = inlined_call_operand.vmem [shape: f32[64,1], index: 2, kind: input, shape index: {}]   ;;  %s820_s3 = inlined_call_operand.vmem [shape: f32[64,128], index: 3, kind: output, shape index: {}]  }
   0x1   :  { %v600_v0 = vld [vmem:[%s817_s1 + $0x40] sm:$0xff]   ;;  %598 = vset.pattern.permute.xlu0 %v640_v1  ;;  %599 = vset.pattern.permute.xlu1 %v640_v1  ;;  %v602_v3 = vld [vmem:[%s817_s1 + $0x48] sm:$0xff]   ;;  %v605_v6 = vld [vmem:[%s817_s1 + $0x50] sm:$0xff]  }
   0x2   :  { %v601_v2 = vld [vmem:[%s817_s1] sm:$0xff]   ;;  %521 = vmatprep.subr.bf16.mxu0 %v600_v0  ;;  %v604_v5 = vld [vmem:[%s817_s1 + $0x8] sm:$0xff]   ;;  %v607_v8 = vld [vmem:[%s817_s1 + $0x10] sm:$0xff]  }
   0x3   :  { %522 = vmatpush3.bf16.msra.mxu0 %v601_v2  ;;  %v603_v4 = vld [vmem:[%s817_s1 + $0x80] sm:$0xff]   ;;  %v606_v7 = vld [vmem:[%s817_s1 + $0x88] sm:$0xff]   ;;  %v608_v9 = vld [vmem:[%s817_s1 + $0x58] sm:$0xff]  }
   0x4   :  { %523 = vmatprep.subr.bf16.mxu0 %v602_v3  ;;  %573 = vmatprep.subr.bf16.mxu1 %v603_v4  ;;  %v609_v10 = vld [vmem:[%s817_s1 + $0x90] sm:$0xff]   ;;  %v610_v11 = vld [vmem:[%s817_s1 + $0x18] sm:$0xff]   ;;  %v611_v12 = vld [vmem:[%s817_s1 + $0x60] sm:$0xff]  }
   0x5   :  { %574 = vmatpush3.bf16.msra.mxu1 %v603_v4  ;;  %v612_v13 = vld [vmem:[%s817_s1 + $0x98] sm:$0xff]   ;;  %v613_v14 = vld [vmem:[%s817_s1 + $0x20] sm:$0xff]   ;;  %v614_v16 = vld [vmem:[%s817_s1 + $0x68] sm:$0xff]  }
   0x6   :  { %575 = vmatprep.subr.bf16.mxu1 %v606_v7  ;;  %v615_v15 = vld [vmem:[%s817_s1 + $0xa0] sm:$0xff]   ;;  %v616_v17 = vld [vmem:[%s817_s1 + $0x28] sm:$0xff]   ;;  %v617_v19 = vld [vmem:[%s817_s1 + $0x70] sm:$0xff]  }
   0x7   :  { %524 = vmatpush3.bf16.msra.mxu0 %v604_v5  ;;  %v618_v18 = vld [vmem:[%s817_s1 + $0xa8] sm:$0xff]   ;;  %v619_v20 = vld [vmem:[%s817_s1 + $0x30] sm:$0xff]   ;;  %v620_v21 = vld [vmem:[%s817_s1 + $0x78] sm:$0xff]  }
   0x8   :  { %525 = vmatprep.subr.bf16.mxu0 %v605_v6  ;;  %v621_v22 = vld [vmem:[%s817_s1 + $0xb0] sm:$0xff]   ;;  %v622_v24 = vld [vmem:[%s817_s1 + $0x38] sm:$0xff]   ;;  %v623_v27 = vld [vmem:[%s818_s0] ss:$12 sps:$4 sm:$0xff]  }
   0x9   :  { %576 = vmatpush3.bf16.msra.mxu1 %v606_v7  ;;  %v625_v23 = vld [vmem:[%s818_s0 + $0x4] ss:$12 sps:$4 sm:$0xff]   ;;  %v627_v25 = vld [vmem:[%s818_s0 + $0x8] ss:$12 sps:$4 sm:$0xff]   ;;  %v626_v26 = vld [vmem:[%s817_s1 + $0xb8] sm:$0xff]  }
   0xa   :  { %577 = vmatprep.subr.bf16.mxu1 %v609_v10  ;;  %367 = vmatprep.mubr.bf16.mxu0 %v625_v23  ;;  %v629_v28 = vld [vmem:[%s818_s0 + $0x1c] ss:$12 sps:$4 sm:$0xff]   ;;  %v628_v29 = vld [vmem:[%s818_s0 + $0x20] ss:$12 sps:$4 sm:$0xff]   ;;  %v81_v31 = vld [vmem:[%s819_s2 + $0x10] sm:$0xff] }
   0xb   :  { %526 = vmatpush3.bf16.msra.mxu0 %v607_v8  ;;  %589 = vmatprep.mubr.bf16.mxu1 %v627_v25  ;;  %v79_v30 = vld [vmem:[%s819_s2] sm:$0xff]  ;;  %v80_v33 = vld [vmem:[%s819_s2 + $0x8] sm:$0xff]  ;;  %v82_v34 = vld [vmem:[%s819_s2 + $0x18] sm:$0xff] }
   0xc   :  { %527 = vmatprep.subr.bf16.mxu0 %v608_v9  ;;  %v635_v32 = vld [vmem:[%s818_s0 + $0x38] ss:$12 sps:$4 sm:$0xff]   ;;  %89 = vperm.xlu0 %598, %v79_v30   ;;  %v632_v36 = vld [vmem:[%s818_s0 + $0x34] ss:$12 sps:$4 sm:$0xff]   ;;  %v636_v38 = vld [vmem:[%s818_s0 + $0x50] ss:$12 sps:$4 sm:$0xff]  }
   0xd   :  { %578 = vmatpush3.bf16.msra.mxu1 %v609_v10  ;;  %99 = vperm.xlu1 %599, %v81_v31   ;;  %v631_v35 = vld [vmem:[%s818_s0 + $0x18] ss:$12 sps:$4 sm:$0xff]   ;;  %v84_v39 = vld [vmem:[%s819_s2 + $0x28] sm:$0xff]  ;;  %v85_v40 = vld [vmem:[%s819_s2 + $0x30] sm:$0xff] }
   0xe   :  { %579 = vmatprep.subr.bf16.mxu1 %v612_v13  ;;  %v83_v37 = vld [vmem:[%s819_s2 + $0x20] sm:$0xff]  ;;  %v86_v41 = vld [vmem:[%s819_s2 + $0x38] sm:$0xff]  ;;  %v639_v44 = vld [vmem:[%s818_s0 + $0x48] ss:$12 sps:$4 sm:$0xff]  }
   0xf   :  { %528 = vmatpush3.bf16.msra.mxu0 %v610_v11  ;;  %v634_v42 = vld [vmem:[%s818_s0 + $0x30] ss:$12 sps:$4 sm:$0xff]   ;;  %v637_v43 = vld [vmem:[%s818_s0 + $0x4c] ss:$12 sps:$4 sm:$0xff]  }
  0x10   :  { %529 = vmatprep.subr.bf16.mxu0 %v611_v12  ;;  %94 = vperm.xlu0 %598, %v80_v33  }
  0x11   :  { %580 = vmatpush3.bf16.msra.mxu1 %v612_v13  ;;  %104 = vperm.xlu1 %599, %v82_v34  }
  0x12   :  { %581 = vmatprep.subr.bf16.mxu1 %v615_v15 }
  0x13   :  { %530 = vmatpush3.bf16.msra.mxu0 %v613_v14 }
  0x14   :  { %531 = vmatprep.subr.bf16.mxu0 %v614_v16  ;;  %109 = vperm.xlu0 %598, %v83_v37  }
  0x15   :  { %582 = vmatpush3.bf16.msra.mxu1 %v615_v15  ;;  %114 = vperm.xlu1 %599, %v84_v39  }
  0x16   :  { %583 = vmatprep.subr.bf16.mxu1 %v618_v18 }
  0x17   :  { %532 = vmatpush3.bf16.msra.mxu0 %v616_v17 }
  0x18   :  { %533 = vmatprep.subr.bf16.mxu0 %v617_v19  ;;  %119 = vperm.xlu0 %598, %v85_v40  }
  0x19   :  { %584 = vmatpush3.bf16.msra.mxu1 %v618_v18  ;;  %124 = vperm.xlu1 %599, %v86_v41  }
  0x1a   :  { %585 = vmatprep.subr.bf16.mxu1 %v621_v22 }
  0x1b   :  { %534 = vmatpush3.bf16.msra.mxu0 %v619_v20 }
  0x1c   :  { %535 = vmatprep.subr.bf16.mxu0 %v620_v21 }
  0x1d   :  { %586 = vmatpush3.bf16.msra.mxu1 %v621_v22 }
  0x1e   :  { %587 = vmatprep.subr.bf16.mxu1 %v626_v26 }
  0x1f   :  { %536 = vmatpush3.bf16.msra.mxu0 %v622_v24 }
  0x21   :  { %588 = vmatpush3.bf16.msra.mxu1 %v626_v26 }
  0x22   :  { %368 = vmatmul.mubr.bf16.vlgmr.msra.gmra.mrb[0].mxu0 %v623_v27 }
  0x23   :  { %375 = vmatprep.mubr.bf16.mxu0 %v629_v28 }
  0x24   :  { %590 = vmatmul.mubr.bf16.vlgmr.msra.gmra.mrb[0].mxu1 %v628_v29 }
  0x25   :  { %593 = vmatprep.mubr.bf16.mxu1 %v635_v32 }
  0x2a   :  { %376 = vmatmul.mubr.bf16.gmra.mrb[4].mxu0 %v631_v35 }
  0x2b   :  { %383 = vmatprep.mubr.bf16.mxu0 %v632_v36 }
  0x2c   :  { %594 = vmatmul.mubr.bf16.gmra.mrb[4].mxu1 %v636_v38 }
  0x32   :  { %384 = vmatmul.mubr.bf16.gmra.mrb[8].mxu0 %v634_v42 }
  0x33   :  { %391 = vmatprep.mubr.bf16.mxu0 %v637_v43 }
  0x3a   :  { %392 = vmatmul.mubr.bf16.gmra.mrb[12].mxu0 %v639_v44 }
  0x8b   :  { %v90_v45 = vpop.permute.xlu0 %89 }
  0x8c   :  { %v100_v60 = vpop.permute.xlu1 %99 }
  0x8f   :  { %v95_v50 = vpop.permute.xlu0 %94 }
  0x90   :  { %v105_v9 = vpop.permute.xlu1 %104 }
  0x93   :  { %v110_v21 = vpop.permute.xlu0 %109 }
  0x94   :  { %v115_v25 = vpop.permute.xlu1 %114 }
  0x97   :  { %v120_v35 = vpop.permute.xlu0 %119 }
  0x98   :  { %v125_v39 = vpop.permute.xlu1 %124 }
  0xf5   :  { %v537_v46 = vpop.f32.mrb[0].mxu0 }
  0xf6   :  { %v538_v47 = vpop.f32.mrb[1].mxu0 }
  0xf7   :  { %v539_v48 = vadd.f32 %v538_v47, %v537_v46  ;;  %v540_v49 = vpop.f32.mrb[2].mxu0  ;;  %v591_v52 = vpop.f32.mrb[0].mxu1 }
  0xf8   :  { %v541_v51 = vpop.f32.mrb[3].mxu0  ;;  %v434_v55 = vpop.f32.mrb[1].mxu1 }
  0xf9   :  { %v542_v53 = vadd.f32 %v541_v51, %v540_v49  ;;  %v370_v54 = vadd.f32 %v539_v48, %v90_v45  ;;  %v592_v56 = vpop.f32.mrb[2].mxu1 }
  0xfa   :  { %v437_v59 = vpop.f32.mrb[3].mxu1 }
  0xfb   :  { %v373_v57 = vadd.f32 %v542_v53, %v95_v50  ;;  %v435_v58 = vadd.f32 %v434_v55, %v370_v54 }
  0xfd   :  { %v465_v61 = vmax.f32 %v435_v58, 0.0  ;;  %v438_v62 = vadd.f32 %v437_v59, %v373_v57  ;;  %v543_v63 = vpop.f32.mrb[4].mxu0 }
  0xfe   :  { %v544_v0 = vpop.f32.mrb[5].mxu0 }
  0xff   :  { %473 = vst [vmem:[%s820_s3] sm:$0xff] %v465_v61  ;;  %v466_v1 = vmax.f32 %v438_v62, 0.0  ;;  %v545_v2 = vadd.f32 %v544_v0, %v543_v63  ;;  %v546_v3 = vpop.f32.mrb[6].mxu0  ;;  %v595_v5 = vpop.f32.mrb[4].mxu1 }
 0x100   :  { %v547_v4 = vpop.f32.mrb[7].mxu0  ;;  %v450_v8 = vpop.f32.mrb[5].mxu1 }
 0x101   :  { %474 = vst [vmem:[%s820_s3 + $0x8] sm:$0xff] %v466_v1  ;;  %v378_v6 = vadd.f32 %v545_v2, %v100_v60  ;;  %v548_v7 = vadd.f32 %v547_v4, %v546_v3  ;;  %v596_v10 = vpop.f32.mrb[6].mxu1 }
 0x102   :  { %v453_v13 = vpop.f32.mrb[7].mxu1 }
 0x103   :  { %v443_v11 = vadd.f32 %v591_v52, %v378_v6  ;;  %v381_v12 = vadd.f32 %v548_v7, %v105_v9 }
 0x105   :  { %v467_v14 = vmax.f32 %v443_v11, 0.0  ;;  %v446_v15 = vadd.f32 %v592_v56, %v381_v12  ;;  %v549_v16 = vpop.f32.mrb[8].mxu0 }
 0x106   :  { %v550_v17 = vpop.f32.mrb[9].mxu0 }
 0x107   :  { %475 = vst [vmem:[%s820_s3 + $0x10] sm:$0xff] %v467_v14  ;;  %v468_v18 = vmax.f32 %v446_v15, 0.0  ;;  %v551_v19 = vadd.f32 %v550_v17, %v549_v16  ;;  %v552_v20 = vpop.f32.mrb[10].mxu0 }
 0x108   :  { %v553_v22 = vpop.f32.mrb[11].mxu0 }
 0x109   :  { %476 = vst [vmem:[%s820_s3 + $0x18] sm:$0xff] %v468_v18  ;;  %v554_v23 = vadd.f32 %v553_v22, %v552_v20  ;;  %v386_v24 = vadd.f32 %v551_v19, %v110_v21 }
 0x10b   :  { %v451_v26 = vadd.f32 %v450_v8, %v386_v24  ;;  %v389_v27 = vadd.f32 %v554_v23, %v115_v25 }
 0x10d   :  { %v469_v28 = vmax.f32 %v451_v26, 0.0  ;;  %v454_v29 = vadd.f32 %v453_v13, %v389_v27  ;;  %v555_v30 = vpop.f32.mrb[12].mxu0 }
 0x10e   :  { %v556_v31 = vpop.f32.mrb[13].mxu0 }
 0x10f   :  { %477 = vst [vmem:[%s820_s3 + $0x20] sm:$0xff] %v469_v28  ;;  %v470_v32 = vmax.f32 %v454_v29, 0.0  ;;  %v557_v33 = vadd.f32 %v556_v31, %v555_v30  ;;  %v558_v34 = vpop.f32.mrb[14].mxu0 }
 0x110   :  { %v559_v36 = vpop.f32.mrb[15].mxu0 }
 0x111   :  { %478 = vst [vmem:[%s820_s3 + $0x28] sm:$0xff] %v470_v32  ;;  %v394_v37 = vadd.f32 %v557_v33, %v120_v35  ;;  %v560_v38 = vadd.f32 %v559_v36, %v558_v34 }
 0x113   :  { %v459_v40 = vadd.f32 %v595_v5, %v394_v37  ;;  %v397_v41 = vadd.f32 %v560_v38, %v125_v39 }
 0x115   :  { %v471_v42 = vmax.f32 %v459_v40, 0.0  ;;  %v462_v43 = vadd.f32 %v596_v10, %v397_v41 }
 0x117   :  { %479 = vst [vmem:[%s820_s3 + $0x30] sm:$0xff] %v471_v42  ;;  %v472_v44 = vmax.f32 %v462_v43, 0.0 }
 0x119   :  { %480 = vst [vmem:[%s820_s3 + $0x38] sm:$0xff] %v472_v44 }

// kernel: generator_forward.8
= control target key start
LH: loop header
LB: loop body
LE: loop exit
PB: predicated region body
PF: predicated region fallthrough
CT: control target
= control target key end

     0   :  { %s943_s12 = smov 0   ;;  %s945_s13 = smov 0   ;;  %s1133_s0 = inlined_call_operand.vmem [shape: bf16[32,256], index: 0, kind: input, shape index: {}]   ;;  %s1134_s1 = inlined_call_operand.vmem [shape: bf16[256,512], index: 1, kind: input, shape index: {}]   ;;  %s1135_s2 = inlined_call_operand.vmem [shape: f32[32,1], index: 2, kind: input, shape index: {}]   ;;  %s1136_s3 = inlined_call_operand.vmem [shape: f32[32,512], index: 3, kind: output, shape index: {}]  }
   0x1   :  { %s947_s14 = smov 0  }
   0x2 LB: > { %s732_s15 = sadd.s32 4294967295, %s920_s14   ;;  %s960_s16 = sadd.s32 1, %s920_s14   ;;  %s920_s14 = sphi %s947_s14, %s1140_s14   ;;  %s916_s13 = sphi %s945_s13, %s1139_s13   ;;  %s912_s12 = sphi %s943_s12, %s1138_s12  }
   0x3   : > { %s38_s17 = ssub.s32 %s920_s14, %s960_s16  ;;  %s41_s18 = sadd.s32 1, %s916_s13 }
   0x4   : > { %p39_p0 = scmp.eq.s32.totalorder %s38_s17, 0  ;;  %p48_p1 = scmp.ne.s32.totalorder %s916_s13, %s912_s12 }
   0x5   : > { %p49_p2 = scmp.eq.s32.totalorder %s920_s14, 0  ;;  %p99_p3 = scmp.eq.s32.totalorder %s732_s15, 1 }
   0x6   : > { %s971_s19 = scalar_select %p39_p0, %s916_s13, %s41_s18  }
   0x7   : > { %p50_p4 = por %p49_p2, %p48_p1  ;;  %p973_p5 = por %p99_p3, %p48_p1 }
   0x8   : > { %p735_p6 = scmp.ge.s32.totalorder %s920_s14, 2 }
   0xa   : > { %127 = sbr.rel (%p735_p6) target bundleno = 37 (0x25), region = 24 }
  0x11   : > { %130 = sbr.rel (!%p50_p4) target bundleno = 37 (0x25), region = 28  ;;  %s132_s21 = sand.u32 (%p50_p4), 1, %s916_s13  }
  0x12   : > { %s783_s22 = sshll.u32 (%p50_p4), %s920_s14, 3  ;;  %s736_s23 = sshll.u32 (%p50_p4), %s132_s21, 8 }
  0x13   : > { %s983_s26 = scalar_lea.vmem (%p50_p4), %s1134_s1, %s783_s22  ;;  %s988_s27 = scalar_lea.vmem (%p50_p4), [#allocation2], %s736_s23 }
  0x14   : > { %v227_v0 = vld [vmem:[%s983_s26] sm:$0xff] (%p50_p4)  ;;  %v229_v1 = vld [vmem:[%s983_s26 + $0x10] sm:$0xff] (%p50_p4) }
  0x15   : > { %v231_v2 = vld [vmem:[%s983_s26 + $0x20] sm:$0xff] (%p50_p4)  ;;  %228 = vst [vmem:[%s988_s27] sm:$0xff] (%p50_p4), %v227_v0  ;;  %230 = vst [vmem:[%s988_s27 + $0x8] sm:$0xff] (%p50_p4), %v229_v1  ;;  %v233_v3 = vld [vmem:[%s983_s26 + $0x30] sm:$0xff] (%p50_p4) }
  0x16   : > { %232 = vst [vmem:[%s988_s27 + $0x10] sm:$0xff] (%p50_p4), %v231_v2  ;;  %v235_v4 = vld [vmem:[%s983_s26 + $0x40] sm:$0xff] (%p50_p4)  ;;  %v237_v5 = vld [vmem:[%s983_s26 + $0x50] sm:$0xff] (%p50_p4)  ;;  %234 = vst [vmem:[%s988_s27 + $0x18] sm:$0xff] (%p50_p4), %v233_v3 }
  0x17   : > { %236 = vst [vmem:[%s988_s27 + $0x20] sm:$0xff] (%p50_p4), %v235_v4  ;;  %238 = vst [vmem:[%s988_s27 + $0x28] sm:$0xff] (%p50_p4), %v237_v5  ;;  %v239_v6 = vld [vmem:[%s983_s26 + $0x60] sm:$0xff] (%p50_p4)  ;;  %v241_v7 = vld [vmem:[%s983_s26 + $0x70] sm:$0xff] (%p50_p4) }
  0x18   : > { %v243_v8 = vld [vmem:[%s983_s26 + $0x80] sm:$0xff]  ;;  %240 = vst [vmem:[%s988_s27 + $0x30] sm:$0xff] %v239_v6  ;;  %242 = vst [vmem:[%s988_s27 + $0x38] sm:$0xff] %v241_v7  ;;  %v245_v9 = vld [vmem:[%s983_s26 + $0x90] sm:$0xff] }
  0x19   : > { %244 = vst [vmem:[%s988_s27 + $0x40] sm:$0xff] %v243_v8  ;;  %v247_v10 = vld [vmem:[%s983_s26 + $0xa0] sm:$0xff]  ;;  %v249_v11 = vld [vmem:[%s983_s26 + $0xb0] sm:$0xff]  ;;  %246 = vst [vmem:[%s988_s27 + $0x48] sm:$0xff] %v245_v9 }
  0x1a   : > { %248 = vst [vmem:[%s988_s27 + $0x50] sm:$0xff] %v247_v10  ;;  %250 = vst [vmem:[%s988_s27 + $0x58] sm:$0xff] %v249_v11  ;;  %v251_v12 = vld [vmem:[%s983_s26 + $0xc0] sm:$0xff]  ;;  %v253_v13 = vld [vmem:[%s983_s26 + $0xd0] sm:$0xff] }
  0x1b   : > { %v255_v14 = vld [vmem:[%s983_s26 + $0xe0] sm:$0xff]  ;;  %252 = vst [vmem:[%s988_s27 + $0x60] sm:$0xff] %v251_v12  ;;  %254 = vst [vmem:[%s988_s27 + $0x68] sm:$0xff] %v253_v13  ;;  %v257_v15 = vld [vmem:[%s983_s26 + $0xf0] sm:$0xff] }
  0x1c   : > { %256 = vst [vmem:[%s988_s27 + $0x70] sm:$0xff] %v255_v14  ;;  %v259_v16 = vld [vmem:[%s983_s26 + $0x100] sm:$0xff]  ;;  %v261_v17 = vld [vmem:[%s983_s26 + $0x110] sm:$0xff]  ;;  %258 = vst [vmem:[%s988_s27 + $0x78] sm:$0xff] %v257_v15 }
  0x1d   : > { %260 = vst [vmem:[%s988_s27 + $0x80] sm:$0xff] %v259_v16  ;;  %262 = vst [vmem:[%s988_s27 + $0x88] sm:$0xff] %v261_v17  ;;  %v263_v18 = vld [vmem:[%s983_s26 + $0x120] sm:$0xff]  ;;  %v265_v19 = vld [vmem:[%s983_s26 + $0x130] sm:$0xff] }
  0x1e   : > { %v267_v20 = vld [vmem:[%s983_s26 + $0x140] sm:$0xff]  ;;  %264 = vst [vmem:[%s988_s27 + $0x90] sm:$0xff] %v263_v18  ;;  %266 = vst [vmem:[%s988_s27 + $0x98] sm:$0xff] %v265_v19  ;;  %v269_v21 = vld [vmem:[%s983_s26 + $0x150] sm:$0xff] }
  0x1f   : > { %268 = vst [vmem:[%s988_s27 + $0xa0] sm:$0xff] %v267_v20  ;;  %v271_v22 = vld [vmem:[%s983_s26 + $0x160] sm:$0xff]  ;;  %v273_v23 = vld [vmem:[%s983_s26 + $0x170] sm:$0xff]  ;;  %270 = vst [vmem:[%s988_s27 + $0xa8] sm:$0xff] %v269_v21 }
  0x20   : > { %272 = vst [vmem:[%s988_s27 + $0xb0] sm:$0xff] %v271_v22  ;;  %274 = vst [vmem:[%s988_s27 + $0xb8] sm:$0xff] %v273_v23  ;;  %v275_v24 = vld [vmem:[%s983_s26 + $0x180] sm:$0xff]  ;;  %v277_v25 = vld [vmem:[%s983_s26 + $0x190] sm:$0xff] }
  0x21   : > { %v279_v26 = vld [vmem:[%s983_s26 + $0x1a0] sm:$0xff]  ;;  %276 = vst [vmem:[%s988_s27 + $0xc0] sm:$0xff] %v275_v24  ;;  %278 = vst [vmem:[%s988_s27 + $0xc8] sm:$0xff] %v277_v25  ;;  %v281_v27 = vld [vmem:[%s983_s26 + $0x1b0] sm:$0xff] }
  0x22   : > { %280 = vst [vmem:[%s988_s27 + $0xd0] sm:$0xff] %v279_v26  ;;  %v283_v28 = vld [vmem:[%s983_s26 + $0x1c0] sm:$0xff]  ;;  %v285_v29 = vld [vmem:[%s983_s26 + $0x1d0] sm:$0xff]  ;;  %282 = vst [vmem:[%s988_s27 + $0xd8] sm:$0xff] %v281_v27 }
  0x23   : > { %284 = vst [vmem:[%s988_s27 + $0xe0] sm:$0xff] %v283_v28  ;;  %286 = vst [vmem:[%s988_s27 + $0xe8] sm:$0xff] %v285_v29  ;;  %v287_v30 = vld [vmem:[%s983_s26 + $0x1e0] sm:$0xff]  ;;  %v289_v31 = vld [vmem:[%s983_s26 + $0x1f0] sm:$0xff] }
  0x24   : > { %288 = vst [vmem:[%s988_s27 + $0xf0] sm:$0xff] %v287_v30  ;;  %290 = vst [vmem:[%s988_s27 + $0xf8] sm:$0xff] %v289_v31 }
  0x25 PF: > { %p739_p7 = scmp.ge.s32.totalorder %s920_s14, 1  ;;  %p295_p8 = scmp.lt.s32.totalorder %s920_s14, 3 }
  0x27   : > { %p296_p9 = pnand %p739_p7, %p295_p8 }
  0x28   : > { %s302_s28 = sand.u32 (!%p296_p9), 1, %s912_s12   ;;  %v894_v32 = vld [vmem:[%s1133_s0 + $0x4] ss:$8 sps:$4 sm:$0xff] (!%p296_p9)   ;;  %v922_v33 = vmov (!%p296_p9), 0   ;;  %v897_v34 = vld [vmem:[%s1133_s0 + $0x14] ss:$8 sps:$4 sm:$0xff] (!%p296_p9)  }
  0x29   : > { %299 = sbr.rel (%p296_p9) target bundleno = 337 (0x151), region = 66  ;;  %s740_s29 = sshll.u32 (!%p296_p9), %s302_s28, 8  ;;  %843 = vset.pattern.permute.xlu1 (!%p296_p9), %v922_v33  ;;  %842 = vset.pattern.permute.xlu0 (!%p296_p9), %v922_v33  ;;  %v364_v35 = vld [vmem:[%s1135_s2 + $0x10] sm:$0xff] (!%p296_p9)  ;;  %v362_v49 = vld [vmem:[%s1135_s2] sm:$0xff] (!%p296_p9)  ;;  %v365_v50 = vld [vmem:[%s1135_s2 + $0x18] sm:$0xff] (!%p296_p9) }
  0x2a   : > { %s1065_s9 = scalar_lea.vmem (!%p296_p9), [#allocation2], %s740_s29  ;;  %598 = vmatprep.mubr.bf16.mxu0 (!%p296_p9), %v894_v32  ;;  %378 = vperm.xlu1 (!%p296_p9), %843, %v364_v35   ;;  %v363_v52 = vld [vmem:[%s1135_s2 + $0x8] sm:$0xff] (!%p296_p9)  ;;  %v895_v8 = vld [vmem:[%s1133_s0 + $0x10] ss:$8 sps:$4 sm:$0xff] (!%p296_p9)   ;;  %s741_s27 = sshll.u32 (!%p296_p9), %s302_s28, 6 }
  0x2b   : > { %v844_v36 = vld [vmem:[%s1065_s9 + $0x4] ss:$8 sps:$4 sm:$0xff] (!%p296_p9)   ;;  %v846_v37 = vld [vmem:[%s1065_s9] ss:$8 sps:$4 sm:$0xff] (!%p296_p9)   ;;  %608 = vmatprep.mubr.bf16.mxu1 (!%p296_p9), %v897_v34  ;;  %v847_v38 = vld [vmem:[%s1065_s9 + $0x14] ss:$8 sps:$4 sm:$0xff] (!%p296_p9)   ;;  %368 = vperm.xlu0 (!%p296_p9), %842, %v362_v49  }
  0x2c   : > { %566 = vmatprep.subr.bf16.mxu0 (!%p296_p9), %v844_v36  ;;  %785 = vmatprep.subr.bf16.mxu1 (!%p296_p9), %v844_v36  ;;  %v849_v39 = vld [vmem:[%s1065_s9 + $0x10] ss:$8 sps:$4 sm:$0xff] (!%p296_p9)   ;;  %v850_v40 = vld [vmem:[%s1065_s9 + $0x24] ss:$8 sps:$4 sm:$0xff] (!%p296_p9)   ;;  %v852_v41 = vld [vmem:[%s1065_s9 + $0x20] ss:$8 sps:$4 sm:$0xff] (!%p296_p9)  }
  0x2d   : > { %567 = vmatpush1.bf16.msra.mxu0 (!%p296_p9), %v846_v37  ;;  %801 = vmatpush1.bf16.msra.mxu1 (!%p296_p9), %v846_v37  ;;  %v853_v42 = vld [vmem:[%s1065_s9 + $0x34] ss:$8 sps:$4 sm:$0xff] (!%p296_p9)   ;;  %v855_v43 = vld [vmem:[%s1065_s9 + $0x30] ss:$8 sps:$4 sm:$0xff] (!%p296_p9)   ;;  %v856_v44 = vld [vmem:[%s1065_s9 + $0x44] ss:$8 sps:$4 sm:$0xff] (!%p296_p9)  }
  0x2e   : > { %568 = vmatprep.subr.bf16.mxu0 (!%p296_p9), %v847_v38  ;;  %786 = vmatprep.subr.bf16.mxu1 (!%p296_p9), %v847_v38  ;;  %v858_v45 = vld [vmem:[%s1065_s9 + $0x40] ss:$8 sps:$4 sm:$0xff] (!%p296_p9)   ;;  %v859_v46 = vld [vmem:[%s1065_s9 + $0x54] ss:$8 sps:$4 sm:$0xff] (!%p296_p9)   ;;  %v861_v47 = vld [vmem:[%s1065_s9 + $0x50] ss:$8 sps:$4 sm:$0xff] (!%p296_p9)  }
  0x2f   : > { %v862_v48 = vld [vmem:[%s1065_s9 + $0x64] ss:$8 sps:$4 sm:$0xff] (!%p296_p9)   ;;  %383 = vperm.xlu1 (!%p296_p9), %843, %v365_v50   ;;  %v864_v51 = vld [vmem:[%s1065_s9 + $0x60] ss:$8 sps:$4 sm:$0xff] (!%p296_p9)   ;;  %v865_v53 = vld [vmem:[%s1065_s9 + $0x74] ss:$8 sps:$4 sm:$0xff] (!%p296_p9)   ;;  %373 = vperm.xlu0 (!%p296_p9), %842, %v363_v52  }
  0x30   : > { %v867_v54 = vld [vmem:[%s1065_s9 + $0x70] ss:$8 sps:$4 sm:$0xff]   ;;  %v868_v55 = vld [vmem:[%s1065_s9 + $0x84] ss:$8 sps:$4 sm:$0xff]   ;;  %v870_v56 = vld [vmem:[%s1065_s9 + $0x80] ss:$8 sps:$4 sm:$0xff]  }
  0x31   : > { %569 = vmatpush1.bf16.msra.mxu0 %v849_v39  ;;  %802 = vmatpush1.bf16.msra.mxu1 %v849_v39  ;;  %v871_v57 = vld [vmem:[%s1065_s9 + $0x94] ss:$8 sps:$4 sm:$0xff]   ;;  %v873_v58 = vld [vmem:[%s1065_s9 + $0x90] ss:$8 sps:$4 sm:$0xff]   ;;  %v874_v59 = vld [vmem:[%s1065_s9 + $0xa4] ss:$8 sps:$4 sm:$0xff]  }
  0x32   : > { %570 = vmatprep.subr.bf16.mxu0 %v850_v40  ;;  %787 = vmatprep.subr.bf16.mxu1 %v850_v40  ;;  %v876_v60 = vld [vmem:[%s1065_s9 + $0xa0] ss:$8 sps:$4 sm:$0xff]   ;;  %v877_v61 = vld [vmem:[%s1065_s9 + $0xb4] ss:$8 sps:$4 sm:$0xff]   ;;  %v879_v62 = vld [vmem:[%s1065_s9 + $0xb0] ss:$8 sps:$4 sm:$0xff]  }
  0x33   : > { %v880_v63 = vld [vmem:[%s1065_s9 + $0xc4] ss:$8 sps:$4 sm:$0xff]   ;;  %v882_v0 = vld [vmem:[%s1065_s9 + $0xc0] ss:$8 sps:$4 sm:$0xff]   ;;  %v883_v1 = vld [vmem:[%s1065_s9 + $0xd4] ss:$8 sps:$4 sm:$0xff]  }
  0x34   : > { %v885_v2 = vld [vmem:[%s1065_s9 + $0xd0] ss:$8 sps:$4 sm:$0xff]   ;;  %v886_v3 = vld [vmem:[%s1065_s9 + $0xe4] ss:$8 sps:$4 sm:$0xff]   ;;  %v888_v4 = vld [vmem:[%s1065_s9 + $0xe0] ss:$8 sps:$4 sm:$0xff]  }
  0x35   : > { %571 = vmatpush1.bf16.msra.mxu0 %v852_v41  ;;  %803 = vmatpush1.bf16.msra.mxu1 %v852_v41  ;;  %v889_v5 = vld [vmem:[%s1065_s9 + $0xf4] ss:$8 sps:$4 sm:$0xff]   ;;  %v891_v6 = vld [vmem:[%s1065_s9 + $0xf0] ss:$8 sps:$4 sm:$0xff]   ;;  %v892_v7 = vld [vmem:[%s1133_s0] ss:$8 sps:$4 sm:$0xff]  }
  0x36   : > { %572 = vmatprep.subr.bf16.mxu0 %v853_v42  ;;  %788 = vmatprep.subr.bf16.mxu1 %v853_v42  ;;  %s323_s12 = scalar_lea.vmem [#allocation3], %s741_s27  ;;  %s784_s28 = sshll.u32 (%p973_p5), %s732_s15, 4 }
  0x37   : > { %s644_s4 = scalar_lea.vmem (%p973_p5), %s1136_s3, %s784_s28 }
  0x39   : > { %573 = vmatpush1.bf16.msra.mxu0 %v855_v43  ;;  %804 = vmatpush1.bf16.msra.mxu1 %v855_v43 }
  0x3a   : > { %574 = vmatprep.subr.bf16.mxu0 %v856_v44  ;;  %789 = vmatprep.subr.bf16.mxu1 %v856_v44 }
  0x3d   : > { %575 = vmatpush1.bf16.msra.mxu0 %v858_v45  ;;  %805 = vmatpush1.bf16.msra.mxu1 %v858_v45 }
  0x3e   : > { %576 = vmatprep.subr.bf16.mxu0 %v859_v46  ;;  %790 = vmatprep.subr.bf16.mxu1 %v859_v46 }
  0x41   : > { %577 = vmatpush1.bf16.msra.mxu0 %v861_v47  ;;  %806 = vmatpush1.bf16.msra.mxu1 %v861_v47 }
  0x42   : > { %578 = vmatprep.subr.bf16.mxu0 %v862_v48  ;;  %791 = vmatprep.subr.bf16.mxu1 %v862_v48 }
  0x45   : > { %579 = vmatpush1.bf16.msra.mxu0 %v864_v51  ;;  %807 = vmatpush1.bf16.msra.mxu1 %v864_v51 }
  0x46   : > { %580 = vmatprep.subr.bf16.mxu0 %v865_v53  ;;  %792 = vmatprep.subr.bf16.mxu1 %v865_v53 }
  0x49   : > { %581 = vmatpush1.bf16.msra.mxu0 %v867_v54  ;;  %808 = vmatpush1.bf16.msra.mxu1 %v867_v54 }
  0x4a   : > { %582 = vmatprep.subr.bf16.mxu0 %v868_v55  ;;  %793 = vmatprep.subr.bf16.mxu1 %v868_v55 }
  0x4d   : > { %583 = vmatpush1.bf16.msra.mxu0 %v870_v56  ;;  %809 = vmatpush1.bf16.msra.mxu1 %v870_v56 }
  0x4e   : > { %584 = vmatprep.subr.bf16.mxu0 %v871_v57  ;;  %794 = vmatprep.subr.bf16.mxu1 %v871_v57 }
  0x51   : > { %585 = vmatpush1.bf16.msra.mxu0 %v873_v58  ;;  %810 = vmatpush1.bf16.msra.mxu1 %v873_v58 }
  0x52   : > { %586 = vmatprep.subr.bf16.mxu0 %v874_v59  ;;  %795 = vmatprep.subr.bf16.mxu1 %v874_v59 }
  0x55   : > { %587 = vmatpush1.bf16.msra.mxu0 %v876_v60  ;;  %811 = vmatpush1.bf16.msra.mxu1 %v876_v60 }
  0x56   : > { %588 = vmatprep.subr.bf16.mxu0 %v877_v61  ;;  %796 = vmatprep.subr.bf16.mxu1 %v877_v61 }
  0x59   : > { %589 = vmatpush1.bf16.msra.mxu0 %v879_v62  ;;  %812 = vmatpush1.bf16.msra.mxu1 %v879_v62 }
  0x5a   : > { %590 = vmatprep.subr.bf16.mxu0 %v880_v63  ;;  %797 = vmatprep.subr.bf16.mxu1 %v880_v63 }
  0x5d   : > { %591 = vmatpush1.bf16.msra.mxu0 %v882_v0  ;;  %813 = vmatpush1.bf16.msra.mxu1 %v882_v0 }
  0x5e   : > { %592 = vmatprep.subr.bf16.mxu0 %v883_v1  ;;  %798 = vmatprep.subr.bf16.mxu1 %v883_v1 }
  0x61   : > { %593 = vmatpush1.bf16.msra.mxu0 %v885_v2  ;;  %814 = vmatpush1.bf16.msra.mxu1 %v885_v2 }
  0x62   : > { %594 = vmatprep.subr.bf16.mxu0 %v886_v3  ;;  %799 = vmatprep.subr.bf16.mxu1 %v886_v3 }
  0x65   : > { %595 = vmatpush1.bf16.msra.mxu0 %v888_v4  ;;  %815 = vmatpush1.bf16.msra.mxu1 %v888_v4 }
  0x66   : > { %596 = vmatprep.subr.bf16.mxu0 %v889_v5  ;;  %800 = vmatprep.subr.bf16.mxu1 %v889_v5 }
  0x69   : > { %597 = vmatpush1.bf16.msra.mxu0 %v891_v6  ;;  %816 = vmatpush1.bf16.msra.mxu1 %v891_v6 }
  0x6c   : > { %599 = vmatmul.mubr.bf16.vlgmr.msra.gmra.mrb[0].mxu0 %v892_v7  ;;  %609 = vmatmul.mubr.bf16.vlgmr.msra.gmra.mrb[0].mxu1 %v895_v8 }
  0xa9   : > { %v379_v9 = vpop.permute.xlu1 %378 }
  0xaa   : > { %v369_v10 = vpop.permute.xlu0 %368 }
  0xae   : > { %v384_v11 = vpop.permute.xlu1 %383  ;;  %v374_v12 = vpop.permute.xlu0 %373 }
 0x13f   : > { %v600_v13 = vpop.f32.mrb[0].mxu0  ;;  %v610_v14 = vpop.f32.mrb[0].mxu1 }
 0x140   : > { %v601_v15 = vadd.f32 %v600_v13, %v369_v10  ;;  %v611_v16 = vadd.f32 %v610_v14, %v379_v9  ;;  %v602_v17 = vpop.f32.mrb[1].mxu0  ;;  %v612_v18 = vpop.f32.mrb[1].mxu1 }
 0x141   : > { %v603_v19 = vadd.f32 %v602_v17, %v369_v10  ;;  %v613_v20 = vadd.f32 %v612_v18, %v379_v9  ;;  %v604_v21 = vpop.f32.mrb[2].mxu0  ;;  %v614_v22 = vpop.f32.mrb[2].mxu1  ;;  %641 = sbr.rel (!%p973_p5) target bundleno = 337 (0x151), region = 74 }
 0x142   : > { %v619_v23 = vmax.f32 %v601_v15, 0.0  ;;  %v623_v24 = vmax.f32 %v611_v16, 0.0  ;;  %v605_v25 = vadd.f32 %v604_v21, %v374_v12  ;;  %v615_v26 = vadd.f32 %v614_v22, %v384_v11  ;;  %v606_v27 = vpop.f32.mrb[3].mxu0  ;;  %v616_v28 = vpop.f32.mrb[3].mxu1 }
 0x143   : > { %v620_v29 = vmax.f32 %v603_v19, 0.0  ;;  %v624_v30 = vmax.f32 %v613_v20, 0.0  ;;  %v607_v31 = vadd.f32 %v606_v27, %v374_v12  ;;  %v617_v32 = vadd.f32 %v616_v28, %v384_v11 }
 0x144   : > { %627 = vst [vmem:[%s323_s12] sm:$0xff] %v619_v23  ;;  %631 = vst [vmem:[%s323_s12 + $0x20] sm:$0xff] %v623_v24  ;;  %v621_v33 = vmax.f32 %v605_v25, 0.0  ;;  %v625_v34 = vmax.f32 %v615_v26, 0.0 }
 0x145   : > { %628 = vst [vmem:[%s323_s12 + $0x8] sm:$0xff] %v620_v29  ;;  %632 = vst [vmem:[%s323_s12 + $0x28] sm:$0xff] %v624_v30  ;;  %v622_v35 = vmax.f32 %v607_v31, 0.0  ;;  %v626_v36 = vmax.f32 %v617_v32, 0.0 }
 0x146   : > { %629 = vst [vmem:[%s323_s12 + $0x10] sm:$0xff] %v621_v33  ;;  %633 = vst [vmem:[%s323_s12 + $0x30] sm:$0xff] %v625_v34 }
 0x147   : > { %630 = vst [vmem:[%s323_s12 + $0x18] sm:$0xff] %v622_v35  ;;  %634 = vst [vmem:[%s323_s12 + $0x38] sm:$0xff] %v626_v36 }
 0x14b   : > { %v657_v37 = vld [vmem:[%s323_s12] sm:$0xff] }
 0x14c   : > { %v659_v38 = vld [vmem:[%s323_s12 + $0x8] sm:$0xff]  ;;  %v665_v41 = vld [vmem:[%s323_s12 + $0x20] sm:$0xff]  ;;  %658 = vst [vmem:[%s644_s4] sm:$0xff] %v657_v37 }
 0x14d   : > { %v661_v39 = vld [vmem:[%s323_s12 + $0x10] sm:$0xff]  ;;  %v667_v42 = vld [vmem:[%s323_s12 + $0x28] sm:$0xff]  ;;  %660 = vst [vmem:[%s644_s4 + $0x8] sm:$0xff] %v659_v38  ;;  %666 = vst [vmem:[%s644_s4 + $0x40] sm:$0xff] %v665_v41 }
 0x14e   : > { %v663_v40 = vld [vmem:[%s323_s12 + $0x18] sm:$0xff]  ;;  %662 = vst [vmem:[%s644_s4 + $0x20] sm:$0xff] %v661_v39  ;;  %668 = vst [vmem:[%s644_s4 + $0x48] sm:$0xff] %v667_v42  ;;  %v669_v43 = vld [vmem:[%s323_s12 + $0x30] sm:$0xff] }
 0x14f   : > { %664 = vst [vmem:[%s644_s4 + $0x28] sm:$0xff] %v663_v40  ;;  %v671_v44 = vld [vmem:[%s323_s12 + $0x38] sm:$0xff]  ;;  %670 = vst [vmem:[%s644_s4 + $0x60] sm:$0xff] %v669_v43 }
 0x150   : > { %672 = vst [vmem:[%s644_s4 + $0x68] sm:$0xff] %v671_v44 }
 0x151 PF: > { %p10_p10 = scmp.ge.s32.totalorder %s960_s16, 4   ;;  %s1138_s12 = smov %s916_s13 }
 0x152   : > { %s1139_s13 = smov %s971_s19  ;;  %s1140_s14 = smov %s960_s16 }
 0x153   :  { %12 = sbr.rel (!%p10_p10) target bundleno = 2 (0x2), region = 128 }

// kernel: generator_forward.9
= control target key start
LH: loop header
LB: loop body
LE: loop exit
PB: predicated region body
PF: predicated region fallthrough
CT: control target
= control target key end

     0   :  { %s1221_s12 = smov 0   ;;  %s1223_s13 = smov 0   ;;  %s1537_s0 = inlined_call_operand.vmem [shape: bf16[12,128], index: 0, kind: input, shape index: {}]   ;;  %s1538_s1 = inlined_call_operand.vmem [shape: bf16[128,2048], index: 1, kind: input, shape index: {}]   ;;  %s1539_s2 = inlined_call_operand.vmem [shape: f32[12,1], index: 2, kind: input, shape index: {}]   ;;  %s1540_s3 = inlined_call_operand.vmem [shape: f32[12,2048], index: 3, kind: output, shape index: {}]  }
   0x1   :  { %s1225_s14 = smov 0  }
   0x2 LB: > { %s1035_s15 = sadd.s32 4294967295, %s1198_s14   ;;  %s1238_s16 = sadd.s32 1, %s1198_s14   ;;  %s1198_s14 = sphi %s1225_s14, %s1544_s14   ;;  %s1194_s13 = sphi %s1223_s13, %s1543_s13   ;;  %s1190_s12 = sphi %s1221_s12, %s1542_s12  }
   0x3   : > { %s38_s17 = ssub.s32 %s1198_s14, %s1238_s16  ;;  %s41_s18 = sadd.s32 1, %s1194_s13 }
   0x4   : > { %p39_p0 = scmp.eq.s32.totalorder %s38_s17, 0  ;;  %p48_p1 = scmp.ne.s32.totalorder %s1194_s13, %s1190_s12 }
   0x5   : > { %p49_p2 = scmp.eq.s32.totalorder %s1198_s14, 0  ;;  %p99_p3 = scmp.eq.s32.totalorder %s1035_s15, 1 }
   0x6   : > { %s1249_s19 = scalar_select %p39_p0, %s1194_s13, %s41_s18  }
   0x7   : > { %p50_p4 = por %p49_p2, %p48_p1  ;;  %p1251_p5 = por %p99_p3, %p48_p1 }
   0x8   : > { %p1038_p6 = scmp.ge.s32.totalorder %s1198_s14, 2 }
   0xa   : > { %127 = sbr.rel (%p1038_p6) target bundleno = 53 (0x35), region = 24 }
  0x11   : > { %130 = sbr.rel (!%p50_p4) target bundleno = 53 (0x35), region = 28  ;;  %s132_s21 = sand.u32 (%p50_p4), 1, %s1194_s13  }
  0x12   : > { %s1115_s22 = sshll.u32 (%p50_p4), %s1198_s14, 5  ;;  %s1039_s23 = sshll.u32 (%p50_p4), %s132_s21, 9 }
  0x13   : > { %s1261_s26 = scalar_lea.vmem (%p50_p4), %s1538_s1, %s1115_s22  ;;  %s1266_s27 = scalar_lea.vmem (%p50_p4), [#allocation2], %s1039_s23 }
  0x14   : > { %v150_v0 = vld [vmem:[%s1261_s26] sm:$0xff] (%p50_p4)  ;;  %v152_v1 = vld [vmem:[%s1261_s26 + $0x8] sm:$0xff] (%p50_p4)  ;;  %v154_v2 = vld [vmem:[%s1261_s26 + $0x10] sm:$0xff] (%p50_p4) }
  0x15   : > { %151 = vst [vmem:[%s1266_s27] sm:$0xff] (%p50_p4), %v150_v0  ;;  %153 = vst [vmem:[%s1266_s27 + $0x8] sm:$0xff] (%p50_p4), %v152_v1  ;;  %v156_v3 = vld [vmem:[%s1261_s26 + $0x18] sm:$0xff] (%p50_p4)  ;;  %v158_v4 = vld [vmem:[%s1261_s26 + $0x40] sm:$0xff] (%p50_p4) }
  0x16   : > { %155 = vst [vmem:[%s1266_s27 + $0x10] sm:$0xff] (%p50_p4), %v154_v2  ;;  %v160_v5 = vld [vmem:[%s1261_s26 + $0x48] sm:$0xff] (%p50_p4)  ;;  %157 = vst [vmem:[%s1266_s27 + $0x18] sm:$0xff] (%p50_p4), %v156_v3  ;;  %v162_v6 = vld [vmem:[%s1261_s26 + $0x50] sm:$0xff] (%p50_p4) }
  0x17   : > { %159 = vst [vmem:[%s1266_s27 + $0x20] sm:$0xff] (%p50_p4), %v158_v4  ;;  %161 = vst [vmem:[%s1266_s27 + $0x28] sm:$0xff] (%p50_p4), %v160_v5  ;;  %v164_v7 = vld [vmem:[%s1261_s26 + $0x58] sm:$0xff] (%p50_p4)  ;;  %v166_v8 = vld [vmem:[%s1261_s26 + $0x80] sm:$0xff] (%p50_p4) }
  0x18   : > { %163 = vst [vmem:[%s1266_s27 + $0x30] sm:$0xff] %v162_v6  ;;  %165 = vst [vmem:[%s1266_s27 + $0x38] sm:$0xff] %v164_v7  ;;  %v168_v9 = vld [vmem:[%s1261_s26 + $0x88] sm:$0xff]  ;;  %v170_v10 = vld [vmem:[%s1261_s26 + $0x90] sm:$0xff] }
  0x19   : > { %167 = vst [vmem:[%s1266_s27 + $0x40] sm:$0xff] %v166_v8  ;;  %v172_v11 = vld [vmem:[%s1261_s26 + $0x98] sm:$0xff]  ;;  %169 = vst [vmem:[%s1266_s27 + $0x48] sm:$0xff] %v168_v9  ;;  %v174_v12 = vld [vmem:[%s1261_s26 + $0xc0] sm:$0xff] }
  0x1a   : > { %171 = vst [vmem:[%s1266_s27 + $0x50] sm:$0xff] %v170_v10  ;;  %173 = vst [vmem:[%s1266_s27 + $0x58] sm:$0xff] %v172_v11  ;;  %v176_v13 = vld [vmem:[%s1261_s26 + $0xc8] sm:$0xff]  ;;  %v178_v14 = vld [vmem:[%s1261_s26 + $0xd0] sm:$0xff] }
  0x1b   : > { %175 = vst [vmem:[%s1266_s27 + $0x60] sm:$0xff] %v174_v12  ;;  %177 = vst [vmem:[%s1266_s27 + $0x68] sm:$0xff] %v176_v13  ;;  %v180_v15 = vld [vmem:[%s1261_s26 + $0xd8] sm:$0xff]  ;;  %v182_v16 = vld [vmem:[%s1261_s26 + $0x100] sm:$0xff] }
  0x1c   : > { %179 = vst [vmem:[%s1266_s27 + $0x70] sm:$0xff] %v178_v14  ;;  %v184_v17 = vld [vmem:[%s1261_s26 + $0x108] sm:$0xff]  ;;  %181 = vst [vmem:[%s1266_s27 + $0x78] sm:$0xff] %v180_v15  ;;  %v186_v18 = vld [vmem:[%s1261_s26 + $0x110] sm:$0xff] }
  0x1d   : > { %183 = vst [vmem:[%s1266_s27 + $0x80] sm:$0xff] %v182_v16  ;;  %185 = vst [vmem:[%s1266_s27 + $0x88] sm:$0xff] %v184_v17  ;;  %v188_v19 = vld [vmem:[%s1261_s26 + $0x118] sm:$0xff]  ;;  %v190_v20 = vld [vmem:[%s1261_s26 + $0x140] sm:$0xff] }
  0x1e   : > { %187 = vst [vmem:[%s1266_s27 + $0x90] sm:$0xff] %v186_v18  ;;  %189 = vst [vmem:[%s1266_s27 + $0x98] sm:$0xff] %v188_v19  ;;  %v192_v21 = vld [vmem:[%s1261_s26 + $0x148] sm:$0xff]  ;;  %v194_v22 = vld [vmem:[%s1261_s26 + $0x150] sm:$0xff] }
  0x1f   : > { %191 = vst [vmem:[%s1266_s27 + $0xa0] sm:$0xff] %v190_v20  ;;  %v196_v23 = vld [vmem:[%s1261_s26 + $0x158] sm:$0xff]  ;;  %193 = vst [vmem:[%s1266_s27 + $0xa8] sm:$0xff] %v192_v21  ;;  %v198_v24 = vld [vmem:[%s1261_s26 + $0x180] sm:$0xff] }
  0x20   : > { %195 = vst [vmem:[%s1266_s27 + $0xb0] sm:$0xff] %v194_v22  ;;  %197 = vst [vmem:[%s1266_s27 + $0xb8] sm:$0xff] %v196_v23  ;;  %v200_v25 = vld [vmem:[%s1261_s26 + $0x188] sm:$0xff]  ;;  %v202_v26 = vld [vmem:[%s1261_s26 + $0x190] sm:$0xff] }
  0x21   : > { %199 = vst [vmem:[%s1266_s27 + $0xc0] sm:$0xff] %v198_v24  ;;  %201 = vst [vmem:[%s1266_s27 + $0xc8] sm:$0xff] %v200_v25  ;;  %v204_v27 = vld [vmem:[%s1261_s26 + $0x198] sm:$0xff]  ;;  %v206_v28 = vld [vmem:[%s1261_s26 + $0x1c0] sm:$0xff] }
  0x22   : > { %203 = vst [vmem:[%s1266_s27 + $0xd0] sm:$0xff] %v202_v26  ;;  %v208_v29 = vld [vmem:[%s1261_s26 + $0x1c8] sm:$0xff]  ;;  %205 = vst [vmem:[%s1266_s27 + $0xd8] sm:$0xff] %v204_v27  ;;  %v210_v30 = vld [vmem:[%s1261_s26 + $0x1d0] sm:$0xff] }
  0x23   : > { %207 = vst [vmem:[%s1266_s27 + $0xe0] sm:$0xff] %v206_v28  ;;  %209 = vst [vmem:[%s1266_s27 + $0xe8] sm:$0xff] %v208_v29  ;;  %v212_v31 = vld [vmem:[%s1261_s26 + $0x1d8] sm:$0xff]  ;;  %v214_v32 = vld [vmem:[%s1261_s26 + $0x200] sm:$0xff] }
  0x24   : > { %211 = vst [vmem:[%s1266_s27 + $0xf0] sm:$0xff] %v210_v30  ;;  %213 = vst [vmem:[%s1266_s27 + $0xf8] sm:$0xff] %v212_v31  ;;  %v216_v33 = vld [vmem:[%s1261_s26 + $0x208] sm:$0xff]  ;;  %v218_v34 = vld [vmem:[%s1261_s26 + $0x210] sm:$0xff] }
  0x25   : > { %215 = vst [vmem:[%s1266_s27 + $0x100] sm:$0xff] %v214_v32  ;;  %v220_v35 = vld [vmem:[%s1261_s26 + $0x218] sm:$0xff]  ;;  %217 = vst [vmem:[%s1266_s27 + $0x108] sm:$0xff] %v216_v33  ;;  %v222_v36 = vld [vmem:[%s1261_s26 + $0x240] sm:$0xff] }
  0x26   : > { %219 = vst [vmem:[%s1266_s27 + $0x110] sm:$0xff] %v218_v34  ;;  %221 = vst [vmem:[%s1266_s27 + $0x118] sm:$0xff] %v220_v35  ;;  %v224_v37 = vld [vmem:[%s1261_s26 + $0x248] sm:$0xff]  ;;  %v226_v38 = vld [vmem:[%s1261_s26 + $0x250] sm:$0xff] }
  0x27   : > { %223 = vst [vmem:[%s1266_s27 + $0x120] sm:$0xff] %v222_v36  ;;  %225 = vst [vmem:[%s1266_s27 + $0x128] sm:$0xff] %v224_v37  ;;  %v228_v39 = vld [vmem:[%s1261_s26 + $0x258] sm:$0xff]  ;;  %v230_v40 = vld [vmem:[%s1261_s26 + $0x280] sm:$0xff] }
  0x28   : > { %227 = vst [vmem:[%s1266_s27 + $0x130] sm:$0xff] %v226_v38  ;;  %v232_v41 = vld [vmem:[%s1261_s26 + $0x288] sm:$0xff]  ;;  %229 = vst [vmem:[%s1266_s27 + $0x138] sm:$0xff] %v228_v39  ;;  %v234_v42 = vld [vmem:[%s1261_s26 + $0x290] sm:$0xff] }
  0x29   : > { %231 = vst [vmem:[%s1266_s27 + $0x140] sm:$0xff] %v230_v40  ;;  %233 = vst [vmem:[%s1266_s27 + $0x148] sm:$0xff] %v232_v41  ;;  %v236_v43 = vld [vmem:[%s1261_s26 + $0x298] sm:$0xff]  ;;  %v238_v44 = vld [vmem:[%s1261_s26 + $0x2c0] sm:$0xff] }
  0x2a   : > { %235 = vst [vmem:[%s1266_s27 + $0x150] sm:$0xff] %v234_v42  ;;  %237 = vst [vmem:[%s1266_s27 + $0x158] sm:$0xff] %v236_v43  ;;  %v240_v45 = vld [vmem:[%s1261_s26 + $0x2c8] sm:$0xff]  ;;  %v242_v46 = vld [vmem:[%s1261_s26 + $0x2d0] sm:$0xff] }
  0x2b   : > { %239 = vst [vmem:[%s1266_s27 + $0x160] sm:$0xff] %v238_v44  ;;  %v244_v47 = vld [vmem:[%s1261_s26 + $0x2d8] sm:$0xff]  ;;  %241 = vst [vmem:[%s1266_s27 + $0x168] sm:$0xff] %v240_v45  ;;  %v246_v48 = vld [vmem:[%s1261_s26 + $0x300] sm:$0xff] }
  0x2c   : > { %243 = vst [vmem:[%s1266_s27 + $0x170] sm:$0xff] %v242_v46  ;;  %245 = vst [vmem:[%s1266_s27 + $0x178] sm:$0xff] %v244_v47  ;;  %v248_v49 = vld [vmem:[%s1261_s26 + $0x308] sm:$0xff]  ;;  %v250_v50 = vld [vmem:[%s1261_s26 + $0x310] sm:$0xff] }
  0x2d   : > { %247 = vst [vmem:[%s1266_s27 + $0x180] sm:$0xff] %v246_v48  ;;  %249 = vst [vmem:[%s1266_s27 + $0x188] sm:$0xff] %v248_v49  ;;  %v252_v51 = vld [vmem:[%s1261_s26 + $0x318] sm:$0xff]  ;;  %v254_v52 = vld [vmem:[%s1261_s26 + $0x340] sm:$0xff] }
  0x2e   : > { %251 = vst [vmem:[%s1266_s27 + $0x190] sm:$0xff] %v250_v50  ;;  %v256_v53 = vld [vmem:[%s1261_s26 + $0x348] sm:$0xff]  ;;  %253 = vst [vmem:[%s1266_s27 + $0x198] sm:$0xff] %v252_v51  ;;  %v258_v54 = vld [vmem:[%s1261_s26 + $0x350] sm:$0xff] }
  0x2f   : > { %255 = vst [vmem:[%s1266_s27 + $0x1a0] sm:$0xff] %v254_v52  ;;  %257 = vst [vmem:[%s1266_s27 + $0x1a8] sm:$0xff] %v256_v53  ;;  %v260_v55 = vld [vmem:[%s1261_s26 + $0x358] sm:$0xff]  ;;  %v262_v56 = vld [vmem:[%s1261_s26 + $0x380] sm:$0xff] }
  0x30   : > { %259 = vst [vmem:[%s1266_s27 + $0x1b0] sm:$0xff] %v258_v54  ;;  %261 = vst [vmem:[%s1266_s27 + $0x1b8] sm:$0xff] %v260_v55  ;;  %v264_v57 = vld [vmem:[%s1261_s26 + $0x388] sm:$0xff]  ;;  %v266_v58 = vld [vmem:[%s1261_s26 + $0x390] sm:$0xff] }
  0x31   : > { %263 = vst [vmem:[%s1266_s27 + $0x1c0] sm:$0xff] %v262_v56  ;;  %v268_v59 = vld [vmem:[%s1261_s26 + $0x398] sm:$0xff]  ;;  %265 = vst [vmem:[%s1266_s27 + $0x1c8] sm:$0xff] %v264_v57  ;;  %v270_v60 = vld [vmem:[%s1261_s26 + $0x3c0] sm:$0xff] }
  0x32   : > { %267 = vst [vmem:[%s1266_s27 + $0x1d0] sm:$0xff] %v266_v58  ;;  %269 = vst [vmem:[%s1266_s27 + $0x1d8] sm:$0xff] %v268_v59  ;;  %v272_v61 = vld [vmem:[%s1261_s26 + $0x3c8] sm:$0xff]  ;;  %v274_v62 = vld [vmem:[%s1261_s26 + $0x3d0] sm:$0xff] }
  0x33   : > { %271 = vst [vmem:[%s1266_s27 + $0x1e0] sm:$0xff] %v270_v60  ;;  %273 = vst [vmem:[%s1266_s27 + $0x1e8] sm:$0xff] %v272_v61  ;;  %v276_v63 = vld [vmem:[%s1261_s26 + $0x3d8] sm:$0xff] }
  0x34   : > { %275 = vst [vmem:[%s1266_s27 + $0x1f0] sm:$0xff] %v274_v62  ;;  %277 = vst [vmem:[%s1266_s27 + $0x1f8] sm:$0xff] %v276_v63 }
  0x35 PF: > { %p1042_p7 = scmp.ge.s32.totalorder %s1198_s14, 1  ;;  %p282_p8 = scmp.lt.s32.totalorder %s1198_s14, 3 }
  0x37   : > { %p283_p9 = pnand %p1042_p7, %p282_p8 }
  0x38   : > { %s289_s28 = sand.u32 (!%p283_p9), 1, %s1190_s12   ;;  %v1200_v0 = vmov (!%p283_p9), 0   ;;  %v380_v1 = vld [vmem:[%s1539_s2] sm:$0xff] (!%p283_p9)  ;;  %v381_v21 = vld [vmem:[%s1539_s2 + $0x8] sm:$0xf] (!%p283_p9) }
  0x39   : > { %286 = sbr.rel (%p283_p9) target bundleno = 368 (0x170), region = 51  ;;  %s1043_s29 = sshll.u32 (!%p283_p9), %s289_s28, 9  ;;  %750 = vmatprep.mubr.bf16.mxu0 (!%p283_p9), %v1200_v0  ;;  %793 = vmatprep.mubr.bf16.mxu1 (!%p283_p9), %v1200_v0 }
  0x3a   : > { %1142 = vset.pattern.permute.xlu0 (!%p283_p9), %v1200_v0  ;;  %s1404_s5 = scalar_lea.vmem (!%p283_p9), [#allocation2], %s1043_s29  ;;  %s1044_s10 = sshll.u32 (!%p283_p9), %s289_s28, 7 }
  0x3b   : > { %v316_v2 = vld [vmem:[%s1404_s5] sm:$0xff] (!%p283_p9)  ;;  %v317_v4 = vld [vmem:[%s1404_s5 + $0x8] sm:$0xff] (!%p283_p9)  ;;  %384 = vperm.xlu0 (!%p283_p9), %1142, %v380_v1   ;;  %s1486_s11 = scalar_lea.vmem (!%p283_p9), [#allocation3], %s1044_s10 }
  0x3c   : > { %v320_v3 = vld [vmem:[%s1404_s5 + $0x20] sm:$0xff] (!%p283_p9)  ;;  %v321_v6 = vld [vmem:[%s1404_s5 + $0x28] sm:$0xff] (!%p283_p9) }
  0x3d   : > { %v1047_v5 = vcombine.high (!%p283_p9), %v316_v2, %v320_v3  ;;  %v1046_v7 = vcombine.low (!%p283_p9), %v316_v2, %v320_v3  ;;  %v324_v8 = vld [vmem:[%s1404_s5 + $0x40] sm:$0xff] (!%p283_p9)  ;;  %v1049_v10 = vcombine.high (!%p283_p9), %v317_v4, %v321_v6  ;;  %v1048_v11 = vcombine.low (!%p283_p9), %v317_v4, %v321_v6  ;;  %v325_v13 = vld [vmem:[%s1404_s5 + $0x48] sm:$0xff] (!%p283_p9)  ;;  %v318_v2 = vld [vmem:[%s1404_s5 + $0x10] sm:$0xff] (!%p283_p9) }
  0x3e   : > { %v328_v9 = vld [vmem:[%s1404_s5 + $0x60] sm:$0xff] (!%p283_p9)  ;;  %v329_v14 = vld [vmem:[%s1404_s5 + $0x68] sm:$0xff] (!%p283_p9)  ;;  %v322_v3 = vld [vmem:[%s1404_s5 + $0x30] sm:$0xff] (!%p283_p9) }
  0x3f   : > { %v1055_v12 = vcombine.high (!%p283_p9), %v324_v8, %v328_v9  ;;  %v332_v15 = vld [vmem:[%s1404_s5 + $0x80] sm:$0xff] (!%p283_p9)  ;;  %718 = vmatprep.subr.bf16.mxu0 (!%p283_p9), %v1047_v5  ;;  %v1057_v16 = vcombine.high (!%p283_p9), %v325_v13, %v329_v14  ;;  %v333_v18 = vld [vmem:[%s1404_s5 + $0x88] sm:$0xff] (!%p283_p9)  ;;  %761 = vmatprep.subr.bf16.mxu1 (!%p283_p9), %v1049_v10  ;;  %v1054_v20 = vcombine.low (!%p283_p9), %v324_v8, %v328_v9  ;;  %v319_v4 = vld [vmem:[%s1404_s5 + $0x18] sm:$0xff] (!%p283_p9) }
  0x40   : > { %v336_v17 = vld [vmem:[%s1404_s5 + $0xa0] sm:$0xff]  ;;  %v337_v19 = vld [vmem:[%s1404_s5 + $0xa8] sm:$0xff]  ;;  %719 = vmatpush1.bf16.msra.mxu0 %v1046_v7  ;;  %762 = vmatpush1.bf16.msra.mxu1 %v1048_v11  ;;  %v1056_v22 = vcombine.low %v325_v13, %v329_v14  ;;  %v323_v5 = vld [vmem:[%s1404_s5 + $0x38] sm:$0xff]  ;;  %v1051_v8 = vcombine.high %v318_v2, %v322_v3  ;;  %s1116_s12 = sshll.u32 (%p1251_p5), %s1035_s15, 6 }
  0x41   : > { %720 = vmatprep.subr.bf16.mxu0 %v1055_v12  ;;  %v1063_v23 = vcombine.high %v332_v15, %v336_v17  ;;  %763 = vmatprep.subr.bf16.mxu1 %v1057_v16  ;;  %v1065_v24 = vcombine.high %v333_v18, %v337_v19  ;;  %v340_v25 = vld [vmem:[%s1404_s5 + $0xc0] sm:$0xff]  ;;  %v341_v27 = vld [vmem:[%s1404_s5 + $0xc8] sm:$0xff]  ;;  %v1062_v29 = vcombine.low %v332_v15, %v336_v17  ;;  %v326_v10 = vld [vmem:[%s1404_s5 + $0x50] sm:$0xff]  ;;  %s931_s20 = scalar_lea.vmem (%p1251_p5), %s1540_s3, %s1116_s12 }
  0x42   : > { %v344_v26 = vld [vmem:[%s1404_s5 + $0xe0] sm:$0xff]  ;;  %v345_v28 = vld [vmem:[%s1404_s5 + $0xe8] sm:$0xff]  ;;  %389 = vperm.xlu0 %1142, %v381_v21   ;;  %v1064_v30 = vcombine.low %v333_v18, %v337_v19  ;;  %v1053_v9 = vcombine.high %v319_v4, %v323_v5  ;;  %v330_v11 = vld [vmem:[%s1404_s5 + $0x70] sm:$0xff]  ;;  %v1050_v15 = vcombine.low %v318_v2, %v322_v3  ;;  %v1052_v16 = vcombine.low %v319_v4, %v323_v5 }
  0x43   : > { %v1071_v31 = vcombine.high %v340_v25, %v344_v26  ;;  %v1073_v32 = vcombine.high %v341_v27, %v345_v28  ;;  %v348_v33 = vld [vmem:[%s1404_s5 + $0x100] sm:$0xff]  ;;  %v349_v35 = vld [vmem:[%s1404_s5 + $0x108] sm:$0xff]  ;;  %v1070_v37 = vcombine.low %v340_v25, %v344_v26  ;;  %v1072_v38 = vcombine.low %v341_v27, %v345_v28  ;;  %v327_v13 = vld [vmem:[%s1404_s5 + $0x58] sm:$0xff] }
  0x44   : > { %721 = vmatpush1.bf16.msra.mxu0 %v1054_v20  ;;  %764 = vmatpush1.bf16.msra.mxu1 %v1056_v22  ;;  %v352_v34 = vld [vmem:[%s1404_s5 + $0x120] sm:$0xff]  ;;  %v353_v36 = vld [vmem:[%s1404_s5 + $0x128] sm:$0xff]  ;;  %v331_v14 = vld [vmem:[%s1404_s5 + $0x78] sm:$0xff]  ;;  %v1059_v17 = vcombine.high %v326_v10, %v330_v11 }
  0x45   : > { %722 = vmatprep.subr.bf16.mxu0 %v1063_v23  ;;  %765 = vmatprep.subr.bf16.mxu1 %v1065_v24  ;;  %v1079_v39 = vcombine.high %v348_v33, %v352_v34  ;;  %v1081_v40 = vcombine.high %v349_v35, %v353_v36  ;;  %v356_v41 = vld [vmem:[%s1404_s5 + $0x140] sm:$0xff]  ;;  %v357_v43 = vld [vmem:[%s1404_s5 + $0x148] sm:$0xff]  ;;  %v1078_v45 = vcombine.low %v348_v33, %v352_v34  ;;  %v334_v19 = vld [vmem:[%s1404_s5 + $0x90] sm:$0xff] }
  0x46   : > { %v360_v42 = vld [vmem:[%s1404_s5 + $0x160] sm:$0xff]  ;;  %v361_v44 = vld [vmem:[%s1404_s5 + $0x168] sm:$0xff]  ;;  %v1080_v46 = vcombine.low %v349_v35, %v353_v36  ;;  %v1061_v18 = vcombine.high %v327_v13, %v331_v14  ;;  %v338_v20 = vld [vmem:[%s1404_s5 + $0xb0] sm:$0xff]  ;;  %v1058_v23 = vcombine.low %v326_v10, %v330_v11  ;;  %v1060_v24 = vcombine.low %v327_v13, %v331_v14 }
  0x47   : > { %v1087_v47 = vcombine.high %v356_v41, %v360_v42  ;;  %v1089_v48 = vcombine.high %v357_v43, %v361_v44  ;;  %v364_v49 = vld [vmem:[%s1404_s5 + $0x180] sm:$0xff]  ;;  %v365_v51 = vld [vmem:[%s1404_s5 + $0x188] sm:$0xff]  ;;  %v1086_v53 = vcombine.low %v356_v41, %v360_v42  ;;  %v1088_v54 = vcombine.low %v357_v43, %v361_v44  ;;  %v335_v21 = vld [vmem:[%s1404_s5 + $0x98] sm:$0xff] }
  0x48   : > { %723 = vmatpush1.bf16.msra.mxu0 %v1062_v29  ;;  %766 = vmatpush1.bf16.msra.mxu1 %v1064_v30  ;;  %v368_v50 = vld [vmem:[%s1404_s5 + $0x1a0] sm:$0xff]  ;;  %v369_v52 = vld [vmem:[%s1404_s5 + $0x1a8] sm:$0xff]  ;;  %v339_v22 = vld [vmem:[%s1404_s5 + $0xb8] sm:$0xff]  ;;  %v1067_v25 = vcombine.high %v334_v19, %v338_v20 }
  0x49   : > { %724 = vmatprep.subr.bf16.mxu0 %v1071_v31  ;;  %767 = vmatprep.subr.bf16.mxu1 %v1073_v32  ;;  %v1095_v55 = vcombine.high %v364_v49, %v368_v50  ;;  %v1097_v56 = vcombine.high %v365_v51, %v369_v52  ;;  %v372_v57 = vld [vmem:[%s1404_s5 + $0x1c0] sm:$0xff]  ;;  %v373_v59 = vld [vmem:[%s1404_s5 + $0x1c8] sm:$0xff]  ;;  %v1094_v61 = vcombine.low %v364_v49, %v368_v50  ;;  %v342_v27 = vld [vmem:[%s1404_s5 + $0xd0] sm:$0xff] }
  0x4a   : > { %v376_v58 = vld [vmem:[%s1404_s5 + $0x1e0] sm:$0xff]  ;;  %v377_v60 = vld [vmem:[%s1404_s5 + $0x1e8] sm:$0xff]  ;;  %v1096_v62 = vcombine.low %v365_v51, %v369_v52  ;;  %v1069_v26 = vcombine.high %v335_v21, %v339_v22  ;;  %v346_v28 = vld [vmem:[%s1404_s5 + $0xf0] sm:$0xff]  ;;  %v1066_v31 = vcombine.low %v334_v19, %v338_v20  ;;  %v1068_v32 = vcombine.low %v335_v21, %v339_v22 }
  0x4b   : > { %v1103_v63 = vcombine.high %v372_v57, %v376_v58  ;;  %v1105_v1 = vcombine.high %v373_v59, %v377_v60  ;;  %v1102_v6 = vcombine.low %v372_v57, %v376_v58  ;;  %v1104_v7 = vcombine.low %v373_v59, %v377_v60  ;;  %v1450_v12 = vld [vmem:[%s1537_s0] sm:$0x3f]   ;;  %v343_v29 = vld [vmem:[%s1404_s5 + $0xd8] sm:$0xff]  ;;  %v350_v35 = vld [vmem:[%s1404_s5 + $0x110] sm:$0xff] }
  0x4c   : > { %725 = vmatpush1.bf16.msra.mxu0 %v1070_v37  ;;  %768 = vmatpush1.bf16.msra.mxu1 %v1072_v38  ;;  %v347_v30 = vld [vmem:[%s1404_s5 + $0xf8] sm:$0xff]  ;;  %v1075_v33 = vcombine.high %v342_v27, %v346_v28  ;;  %v354_v36 = vld [vmem:[%s1404_s5 + $0x130] sm:$0xff] }
  0x4d   : > { %726 = vmatprep.subr.bf16.mxu0 %v1079_v39  ;;  %769 = vmatprep.subr.bf16.mxu1 %v1081_v40  ;;  %v1077_v34 = vcombine.high %v343_v29, %v347_v30  ;;  %v351_v37 = vld [vmem:[%s1404_s5 + $0x118] sm:$0xff]  ;;  %v1074_v39 = vcombine.low %v342_v27, %v346_v28  ;;  %v1083_v40 = vcombine.high %v350_v35, %v354_v36  ;;  %v358_v42 = vld [vmem:[%s1404_s5 + $0x150] sm:$0xff] }
  0x4e   : > { %v355_v38 = vld [vmem:[%s1404_s5 + $0x138] sm:$0xff]  ;;  %v362_v43 = vld [vmem:[%s1404_s5 + $0x170] sm:$0xff] }
  0x4f   : > { %v1085_v41 = vcombine.high %v351_v37, %v355_v38  ;;  %v359_v44 = vld [vmem:[%s1404_s5 + $0x158] sm:$0xff]  ;;  %v366_v50 = vld [vmem:[%s1404_s5 + $0x190] sm:$0xff] }
  0x50   : > { %727 = vmatpush1.bf16.msra.mxu0 %v1078_v45  ;;  %770 = vmatpush1.bf16.msra.mxu1 %v1080_v46  ;;  %v363_v45 = vld [vmem:[%s1404_s5 + $0x178] sm:$0xff]  ;;  %v1082_v46 = vcombine.low %v350_v35, %v354_v36  ;;  %v370_v51 = vld [vmem:[%s1404_s5 + $0x1b0] sm:$0xff] }
  0x51   : > { %728 = vmatprep.subr.bf16.mxu0 %v1087_v47  ;;  %771 = vmatprep.subr.bf16.mxu1 %v1089_v48  ;;  %v1084_v47 = vcombine.low %v351_v37, %v355_v38  ;;  %v1091_v48 = vcombine.high %v358_v42, %v362_v43  ;;  %v1093_v49 = vcombine.high %v359_v44, %v363_v45  ;;  %v367_v52 = vld [vmem:[%s1404_s5 + $0x198] sm:$0xff]  ;;  %v374_v58 = vld [vmem:[%s1404_s5 + $0x1d0] sm:$0xff] }
  0x52   : > { %v378_v59 = vld [vmem:[%s1404_s5 + $0x1f0] sm:$0xff]  ;;  %v375_v60 = vld [vmem:[%s1404_s5 + $0x1d8] sm:$0xff] }
  0x53   : > { %v1106_v3 = vcombine.low %v374_v58, %v378_v59 }
  0x54   : > { %729 = vmatpush1.bf16.msra.mxu0 %v1086_v53  ;;  %772 = vmatpush1.bf16.msra.mxu1 %v1088_v54  ;;  %v371_v53 = vld [vmem:[%s1404_s5 + $0x1b8] sm:$0xff]  ;;  %v1090_v54 = vcombine.low %v358_v42, %v362_v43 }
  0x55   : > { %730 = vmatprep.subr.bf16.mxu0 %v1095_v55  ;;  %773 = vmatprep.subr.bf16.mxu1 %v1097_v56  ;;  %v1092_v55 = vcombine.low %v359_v44, %v363_v45  ;;  %v1099_v56 = vcombine.high %v366_v50, %v370_v51  ;;  %v1101_v57 = vcombine.high %v367_v52, %v371_v53 }
  0x58   : > { %731 = vmatpush1.bf16.msra.mxu0 %v1094_v61  ;;  %774 = vmatpush1.bf16.msra.mxu1 %v1096_v62  ;;  %v379_v61 = vld [vmem:[%s1404_s5 + $0x1f8] sm:$0xff]  ;;  %v1098_v62 = vcombine.low %v366_v50, %v370_v51 }
  0x59   : > { %732 = vmatprep.subr.bf16.mxu0 %v1103_v63  ;;  %775 = vmatprep.subr.bf16.mxu1 %v1105_v1  ;;  %v1100_v63 = vcombine.low %v367_v52, %v371_v53  ;;  %v1107_v1 = vcombine.high %v374_v58, %v378_v59  ;;  %v1109_v2 = vcombine.high %v375_v60, %v379_v61 }
  0x5a   : > { %v1108_v4 = vcombine.low %v375_v60, %v379_v61 }
  0x5c   : > { %733 = vmatpush1.bf16.msra.mxu0 %v1102_v6  ;;  %776 = vmatpush1.bf16.msra.mxu1 %v1104_v7 }
  0x5d   : > { %804 = vmatprep.subr.bf16.mxu0 %v1051_v8  ;;  %847 = vmatprep.subr.bf16.mxu1 %v1053_v9 }
  0x5f   : > { %751 = vmatmul.mubr.bf16.vlgmr.msra.gmra.mrb[0].mxu0 %v1450_v12  ;;  %794 = vmatmul.mubr.bf16.vlgmr.msra.gmra.mrb[0].mxu1 %v1450_v12 }
  0x60   : > { %805 = vmatpush1.bf16.msra.mxu0 %v1050_v15  ;;  %848 = vmatpush1.bf16.msra.mxu1 %v1052_v16 }
  0x61   : > { %806 = vmatprep.subr.bf16.mxu0 %v1059_v17  ;;  %849 = vmatprep.subr.bf16.mxu1 %v1061_v18 }
  0x62   : > { %836 = vmatprep.mubr.bf16.mxu0 %v1200_v0  ;;  %879 = vmatprep.mubr.bf16.mxu1 %v1200_v0  ;;  %v1076_v0 = vcombine.low %v343_v29, %v347_v30 }
  0x64   : > { %807 = vmatpush1.bf16.msra.mxu0 %v1058_v23  ;;  %850 = vmatpush1.bf16.msra.mxu1 %v1060_v24 }
  0x65   : > { %808 = vmatprep.subr.bf16.mxu0 %v1067_v25  ;;  %851 = vmatprep.subr.bf16.mxu1 %v1069_v26 }
  0x68   : > { %809 = vmatpush1.bf16.msra.mxu0 %v1066_v31  ;;  %852 = vmatpush1.bf16.msra.mxu1 %v1068_v32 }
  0x69   : > { %810 = vmatprep.subr.bf16.mxu0 %v1075_v33  ;;  %853 = vmatprep.subr.bf16.mxu1 %v1077_v34 }
  0x6c   : > { %811 = vmatpush1.bf16.msra.mxu0 %v1074_v39  ;;  %854 = vmatpush1.bf16.msra.mxu1 %v1076_v0 }
  0x6d   : > { %812 = vmatprep.subr.bf16.mxu0 %v1083_v40  ;;  %855 = vmatprep.subr.bf16.mxu1 %v1085_v41 }
  0x70   : > { %813 = vmatpush1.bf16.msra.mxu0 %v1082_v46  ;;  %856 = vmatpush1.bf16.msra.mxu1 %v1084_v47 }
  0x71   : > { %814 = vmatprep.subr.bf16.mxu0 %v1091_v48  ;;  %857 = vmatprep.subr.bf16.mxu1 %v1093_v49 }
  0x74   : > { %815 = vmatpush1.bf16.msra.mxu0 %v1090_v54  ;;  %858 = vmatpush1.bf16.msra.mxu1 %v1092_v55 }
  0x75   : > { %816 = vmatprep.subr.bf16.mxu0 %v1099_v56  ;;  %859 = vmatprep.subr.bf16.mxu1 %v1101_v57 }
  0x78   : > { %817 = vmatpush1.bf16.msra.mxu0 %v1098_v62  ;;  %860 = vmatpush1.bf16.msra.mxu1 %v1100_v63 }
  0x79   : > { %818 = vmatprep.subr.bf16.mxu0 %v1107_v1  ;;  %861 = vmatprep.subr.bf16.mxu1 %v1109_v2 }
  0x7c   : > { %819 = vmatpush1.bf16.msra.mxu0 %v1106_v3  ;;  %862 = vmatpush1.bf16.msra.mxu1 %v1108_v4 }
  0x7f   : > { %837 = vmatmul.mubr.bf16.vlgmr.msra.gmra.mrb[4].mxu0 %v1450_v12  ;;  %880 = vmatmul.mubr.bf16.vlgmr.msra.gmra.mrb[4].mxu1 %v1450_v12 }
  0xba   : > { %v385_v5 = vpop.permute.xlu0 %384 }
  0xc1   : > { %v390_v7 = vpop.permute.xlu0 %389 }
 0x132   : > { %v752_v6 = vpop.f32.mrb[0].mxu0  ;;  %v795_v9 = vpop.f32.mrb[0].mxu1 }
 0x133   : > { %v753_v8 = vadd.f32 %v752_v6, %v385_v5  ;;  %v754_v10 = vpop.f32.mrb[1].mxu0  ;;  %v796_v11 = vadd.f32 %v795_v9, %v385_v5  ;;  %v797_v14 = vpop.f32.mrb[1].mxu1 }
 0x134   : > { %v755_v13 = vadd.f32 %v754_v10, %v385_v5  ;;  %v756_v15 = vpop.f32.mrb[2].mxu0  ;;  %v798_v16 = vadd.f32 %v797_v14, %v385_v5  ;;  %v799_v18 = vpop.f32.mrb[2].mxu1 }
 0x135   : > { %1144 = vtanh.f32 %v753_v8  ;;  %v757_v17 = vadd.f32 %v756_v15, %v390_v7  ;;  %v758_v19 = vpop.f32.mrb[3].mxu0  ;;  %v800_v20 = vadd.f32 %v799_v18, %v390_v7  ;;  %v801_v21 = vpop.f32.mrb[3].mxu1 }
 0x136   : > { %1146 = vtanh.f32 %v796_v11  ;;  %v759_v12 = vadd.f32 %v758_v19, %v390_v7  ;;  %v802_v22 = vadd.f32 %v801_v21, %v390_v7 }
 0x137   : > { %1148 = vtanh.f32 %v755_v13 }
 0x138   : > { %1150 = vtanh.f32 %v798_v16 }
 0x139   : > { %1152 = vtanh.f32 %v757_v17 }
 0x13a   : > { %1154 = vtanh.f32 %v800_v20 }
 0x13b   : > { %1156 = vtanh.f32 %v759_v12 }
 0x13c   : > { %1158 = vtanh.f32 %v802_v22 }
 0x13f   : > { %v1145_v23 = vpop.eup %1144 }
 0x140   : > { %v1147_v24 = vpop.eup %1146  ;;  %906 = vst [vmem:[%s1486_s11] sm:$0xff] %v1145_v23 }
 0x141   : > { %v1149_v25 = vpop.eup %1148  ;;  %908 = vst [vmem:[%s1486_s11 + $0x10] sm:$0xff] %v1147_v24 }
 0x142   : > { %v1151_v26 = vpop.eup %1150  ;;  %907 = vst [vmem:[%s1486_s11 + $0x8] sm:$0xff] %v1149_v25 }
 0x143   : > { %v1153_v27 = vpop.eup %1152  ;;  %909 = vst [vmem:[%s1486_s11 + $0x18] sm:$0xff] %v1151_v26 }
 0x144   : > { %v1155_v28 = vpop.eup %1154  ;;  %914 = vst [vmem:[%s1486_s11 + $0x40] sm:$0xf] %v1153_v27 }
 0x145   : > { %v1157_v29 = vpop.eup %1156  ;;  %916 = vst [vmem:[%s1486_s11 + $0x50] sm:$0xf] %v1155_v28 }
 0x146   : > { %v1159_v30 = vpop.eup %1158  ;;  %915 = vst [vmem:[%s1486_s11 + $0x48] sm:$0xf] %v1157_v29 }
 0x147   : > { %917 = vst [vmem:[%s1486_s11 + $0x58] sm:$0xf] %v1159_v30  ;;  %v944_v54 = vld [vmem:[%s1486_s11] sm:$0xff] (%p1251_p5) }
 0x148   : > { %v948_v56 = vld [vmem:[%s1486_s11 + $0x10] sm:$0xff] (%p1251_p5)  ;;  %945 = vst [vmem:[%s931_s20] sm:$0xff] (%p1251_p5), %v944_v54 }
 0x149   : > { %v946_v55 = vld [vmem:[%s1486_s11 + $0x8] sm:$0xff] (%p1251_p5)  ;;  %949 = vst [vmem:[%s931_s20 + $0x10] sm:$0xff] (%p1251_p5), %v948_v56 }
 0x14a   : > { %v950_v57 = vld [vmem:[%s1486_s11 + $0x18] sm:$0xff] (%p1251_p5)  ;;  %947 = vst [vmem:[%s931_s20 + $0x8] sm:$0xff] (%p1251_p5), %v946_v55 }
 0x14b   : > { %951 = vst [vmem:[%s931_s20 + $0x18] sm:$0xff] (%p1251_p5), %v950_v57  ;;  %v960_v62 = vld [vmem:[%s1486_s11 + $0x40] sm:$0xff] (%p1251_p5) }
 0x14c   : > { %961 = vst [vmem:[%s931_s20 + $0x80] sm:$0xff] (%p1251_p5), %v960_v62  ;;  %v964_v1 = vld [vmem:[%s1486_s11 + $0x50] sm:$0xff] (%p1251_p5) }
 0x14d   : > { %v962_v63 = vld [vmem:[%s1486_s11 + $0x48] sm:$0xff] (%p1251_p5)  ;;  %965 = vst [vmem:[%s931_s20 + $0x90] sm:$0xff] (%p1251_p5), %v964_v1 }
 0x14e   : > { %v966_v2 = vld [vmem:[%s1486_s11 + $0x58] sm:$0xff] (%p1251_p5)  ;;  %963 = vst [vmem:[%s931_s20 + $0x88] sm:$0xff] (%p1251_p5), %v962_v63 }
 0x14f   : > { %967 = vst [vmem:[%s931_s20 + $0x98] sm:$0xff] (%p1251_p5), %v966_v2 }
 0x152   : > { %v838_v31 = vpop.f32.mrb[4].mxu0  ;;  %v881_v33 = vpop.f32.mrb[4].mxu1 }
 0x153   : > { %v839_v32 = vadd.f32 %v838_v31, %v385_v5  ;;  %v840_v34 = vpop.f32.mrb[5].mxu0  ;;  %v882_v35 = vadd.f32 %v881_v33, %v385_v5  ;;  %v883_v37 = vpop.f32.mrb[5].mxu1 }
 0x154   : > { %v841_v36 = vadd.f32 %v840_v34, %v385_v5  ;;  %v842_v38 = vpop.f32.mrb[6].mxu0  ;;  %v884_v39 = vadd.f32 %v883_v37, %v385_v5  ;;  %v885_v40 = vpop.f32.mrb[6].mxu1 }
 0x155   : > { %1160 = vtanh.f32 %v839_v32  ;;  %v843_v0 = vadd.f32 %v842_v38, %v390_v7  ;;  %v844_v41 = vpop.f32.mrb[7].mxu0  ;;  %v886_v42 = vadd.f32 %v885_v40, %v390_v7  ;;  %v887_v43 = vpop.f32.mrb[7].mxu1 }
 0x156   : > { %1162 = vtanh.f32 %v882_v35  ;;  %v845_v44 = vadd.f32 %v844_v41, %v390_v7  ;;  %v888_v45 = vadd.f32 %v887_v43, %v390_v7 }
 0x157   : > { %1164 = vtanh.f32 %v841_v36 }
 0x158   : > { %1166 = vtanh.f32 %v884_v39 }
 0x159   : > { %1168 = vtanh.f32 %v843_v0 }
 0x15a   : > { %1170 = vtanh.f32 %v886_v42 }
 0x15b   : > { %1172 = vtanh.f32 %v845_v44 }
 0x15c   : > { %1174 = vtanh.f32 %v888_v45 }
 0x15f   : > { %v1161_v46 = vpop.eup %1160 }
 0x160   : > { %v1163_v47 = vpop.eup %1162  ;;  %910 = vst [vmem:[%s1486_s11 + $0x20] sm:$0xff] %v1161_v46 }
 0x161   : > { %v1165_v48 = vpop.eup %1164  ;;  %912 = vst [vmem:[%s1486_s11 + $0x30] sm:$0xff] %v1163_v47  ;;  %928 = sbr.rel (!%p1251_p5) target bundleno = 368 (0x170), region = 59 }
 0x162   : > { %v1167_v49 = vpop.eup %1166  ;;  %911 = vst [vmem:[%s1486_s11 + $0x28] sm:$0xff] %v1165_v48 }
 0x163   : > { %v1169_v50 = vpop.eup %1168  ;;  %913 = vst [vmem:[%s1486_s11 + $0x38] sm:$0xff] %v1167_v49 }
 0x164   : > { %v1171_v51 = vpop.eup %1170  ;;  %918 = vst [vmem:[%s1486_s11 + $0x60] sm:$0xf] %v1169_v50 }
 0x165   : > { %v1173_v52 = vpop.eup %1172  ;;  %920 = vst [vmem:[%s1486_s11 + $0x70] sm:$0xf] %v1171_v51 }
 0x166   : > { %v1175_v53 = vpop.eup %1174  ;;  %919 = vst [vmem:[%s1486_s11 + $0x68] sm:$0xf] %v1173_v52 }
 0x167   : > { %921 = vst [vmem:[%s1486_s11 + $0x78] sm:$0xf] %v1175_v53  ;;  %v952_v58 = vld [vmem:[%s1486_s11 + $0x20] sm:$0xff] (%p1251_p5) }
 0x168   : > { %953 = vst [vmem:[%s931_s20 + $0x20] sm:$0xff] %v952_v58  ;;  %v956_v60 = vld [vmem:[%s1486_s11 + $0x30] sm:$0xff] }
 0x169   : > { %v954_v59 = vld [vmem:[%s1486_s11 + $0x28] sm:$0xff]  ;;  %957 = vst [vmem:[%s931_s20 + $0x30] sm:$0xff] %v956_v60 }
 0x16a   : > { %955 = vst [vmem:[%s931_s20 + $0x28] sm:$0xff] %v954_v59  ;;  %v958_v61 = vld [vmem:[%s1486_s11 + $0x38] sm:$0xff] }
 0x16b   : > { %959 = vst [vmem:[%s931_s20 + $0x38] sm:$0xff] %v958_v61  ;;  %v968_v3 = vld [vmem:[%s1486_s11 + $0x60] sm:$0xff] }
 0x16c   : > { %v972_v5 = vld [vmem:[%s1486_s11 + $0x70] sm:$0xff]  ;;  %969 = vst [vmem:[%s931_s20 + $0xa0] sm:$0xff] %v968_v3 }
 0x16d   : > { %v970_v4 = vld [vmem:[%s1486_s11 + $0x68] sm:$0xff]  ;;  %973 = vst [vmem:[%s931_s20 + $0xb0] sm:$0xff] %v972_v5 }
 0x16e   : > { %971 = vst [vmem:[%s931_s20 + $0xa8] sm:$0xff] %v970_v4  ;;  %v974_v6 = vld [vmem:[%s1486_s11 + $0x78] sm:$0xff] }
 0x16f   : > { %975 = vst [vmem:[%s931_s20 + $0xb8] sm:$0xff] %v974_v6 }
 0x170 PF: > { %p10_p10 = scmp.ge.s32.totalorder %s1238_s16, 4   ;;  %s1542_s12 = smov %s1194_s13 }
 0x171   : > { %s1543_s13 = smov %s1249_s19  ;;  %s1544_s14 = smov %s1238_s16 }
 0x172   :  { %12 = sbr.rel (!%p10_p10) target bundleno = 2 (0x2), region = 113 }

</bundles_post_ra>
